<compile_context>
chip_gen: v7x
topology: tpu7x:2x2x1
jax: 0.10.0
libtpu: 0.0.40
codegen_flags: <defaults>
</compile_context>

<pallas_src>
import functools

import jax
import jax.numpy as jnp
from jax.experimental import pallas as pl
from jax.experimental.pallas import tpu as pltpu


def _layer_norm(x, g, b, eps=1e-5):
    mu = jnp.mean(x, axis=-1, keepdims=True)
    xc = x - mu
    var = jnp.mean(xc * xc, axis=-1, keepdims=True)
    return xc * jax.lax.rsqrt(var + eps) * g + b


def _mha_heads(q, k, v, w_o_ref, b_o, mask, head_num, inv_temp):
    """Multi-head scaled-dot-product attention + output projection.

    q: (T, D), k/v: (S, D), w_o_ref: (D, D) ref, b_o: (1, D).
    Per-head contexts are folded directly into the output projection:
        concat_h(ctx_h) @ Wo == sum_h ctx_h @ Wo[h*hd:(h+1)*hd, :]
    which keeps every ref slice sublane-aligned (hd == 8).
    """
    T, D = q.shape
    hd = D // head_num
    acc = None
    for h in range(head_num):
        lo, hi = h * hd, (h + 1) * hd
        qh = q[:, lo:hi]                                   # (T, hd)
        kh = k[:, lo:hi]                                   # (S, hd)
        vh = v[:, lo:hi]                                   # (S, hd)
        # scores = qh @ kh^T  (contract the head dim of both; no explicit transpose)
        sc = jax.lax.dot_general(qh, kh, (((1,), (1,)), ((), ())),
                                 preferred_element_type=jnp.float32) * inv_temp
        if mask is not None:
            sc = sc - mask * jnp.float32(1e30)             # 1.0 == masked
        sc = sc - jnp.max(sc, axis=-1, keepdims=True)
        e = jnp.exp(sc)
        p = e / jnp.sum(e, axis=-1, keepdims=True)
        ctx = jnp.dot(p, vh, preferred_element_type=jnp.float32)            # (T, hd)
        contrib = jnp.dot(ctx, w_o_ref[lo:hi, :],
                          preferred_element_type=jnp.float32)               # (T, D)
        acc = contrib if acc is None else acc + contrib
    return acc + b_o


def _decoder_layer_kernel(
    tgt_ref, src_ref, mask_ref,
    wqkv1_ref, bqkv1_ref, wo1_ref, bo1_ref, ln1g_ref, ln1b_ref,
    wq2_ref, bq2_ref, wkv2_ref, bkv2_ref, wo2_ref, bo2_ref, ln2g_ref, ln2b_ref,
    wf1_ref, bf1_ref, wf2_ref, bf2_ref, ln3g_ref, ln3b_ref,
    out_ref, *, head_num):
    x = tgt_ref[0]          # (T, D)
    s = src_ref[0]          # (S, Ds)
    mask = mask_ref[0]      # (T, T) float32, 1.0 == masked
    T, D = x.shape
    inv_temp = 1.0 / (float(D) ** 0.5)   # temperature = sqrt(head_num * head_dim) = sqrt(D)

    # ---- self attention: q = k = v = tgt, causal mask ----
    qkv = jnp.dot(x, wqkv1_ref[...], preferred_element_type=jnp.float32) + bqkv1_ref[...]
    att1 = _mha_heads(qkv[:, 0 * D:1 * D], qkv[:, 1 * D:2 * D], qkv[:, 2 * D:3 * D],
                      wo1_ref, bo1_ref[...], mask, head_num, inv_temp)
    out1 = _layer_norm(att1 + x, ln1g_ref[...], ln1b_ref[...])

    # ---- cross attention: q = tgt (NOT out1 — this matches the original module), k = v = src ----
    q2 = jnp.dot(x, wq2_ref[...], preferred_element_type=jnp.float32) + bq2_ref[...]
    kv2 = jnp.dot(s, wkv2_ref[...], preferred_element_type=jnp.float32) + bkv2_ref[...]
    att2 = _mha_heads(q2, kv2[:, :D], kv2[:, D:], wo2_ref, bo2_ref[...],
                      None, head_num, inv_temp)
    out2 = _layer_norm(att2 + out1, ln2g_ref[...], ln2b_ref[...])

    # ---- feedforward: Linear -> ReLU -> Dropout(id) -> Linear -> ReLU -> Dropout(id) ----
    hmid = jnp.maximum(jnp.dot(out2, wf1_ref[...], preferred_element_type=jnp.float32)
                       + bf1_ref[...], 0.0)
    ff = jnp.maximum(jnp.dot(hmid, wf2_ref[...], preferred_element_type=jnp.float32)
                     + bf2_ref[...], 0.0)
    out_ref[0] = _layer_norm(ff + out2, ln3g_ref[...], ln3b_ref[...]).astype(out_ref.dtype)


def transformer_decoder_layer_pallas(tgt, src, tgt_mask, params, head_num):
    """tgt: (B, T, D) float32, src: (B, S, Ds) float32, tgt_mask: (B, T, T) bool (True = masked)."""
    B, T, D = tgt.shape
    S, Ds = src.shape[1], src.shape[2]
    F = params["ff_w1"].shape[0]

    # --- weight re-layout (plain JAX glue, done once under jit) ---
    # PyTorch Linear stores (out, in) and computes x @ W^T + b; pre-transpose to (in, out).
    wqkv1 = jnp.concatenate(
        [params["sa_wq"].T, params["sa_wk"].T, params["sa_wv"].T], axis=1)      # (D, 3D)
    bqkv1 = jnp.concatenate(
        [params["sa_bq"], params["sa_bk"], params["sa_bv"]]).reshape(1, 3 * D)
    wo1 = params["sa_wo"].T
    bo1 = params["sa_bo"].reshape(1, D)
    wq2 = params["ca_wq"].T
    bq2 = params["ca_bq"].reshape(1, D)
    wkv2 = jnp.concatenate([params["ca_wk"].T, params["ca_wv"].T], axis=1)      # (Ds, 2D)
    bkv2 = jnp.concatenate([params["ca_bk"], params["ca_bv"]]).reshape(1, 2 * D)
    wo2 = params["ca_wo"].T
    bo2 = params["ca_bo"].reshape(1, D)
    wf1 = params["ff_w1"].T                                                     # (D, F)
    bf1 = params["ff_b1"].reshape(1, F)
    wf2 = params["ff_w2"].T                                                     # (F, D)
    bf2 = params["ff_b2"].reshape(1, D)
    ln1g = params["ln1_g"].reshape(1, D); ln1b = params["ln1_b"].reshape(1, D)
    ln2g = params["ln2_g"].reshape(1, D); ln2b = params["ln2_b"].reshape(1, D)
    ln3g = params["ln3_g"].reshape(1, D); ln3b = params["ln3_b"].reshape(1, D)

    mask_f = tgt_mask.astype(jnp.float32)

    def weight_spec(shape):
        return pl.BlockSpec(shape, lambda b, _n=len(shape): (0,) * _n)

    kernel = functools.partial(_decoder_layer_kernel, head_num=head_num)

    out = pl.pallas_call(
        kernel,
        out_shape=jax.ShapeDtypeStruct((B, T, D), jnp.float32),
        grid_spec=pltpu.PrefetchScalarGridSpec(
            num_scalar_prefetch=0,
            grid=(B,),
            in_specs=[
                pl.BlockSpec((1, T, D), lambda b: (b, 0, 0)),    # tgt
                pl.BlockSpec((1, S, Ds), lambda b: (b, 0, 0)),   # src
                pl.BlockSpec((1, T, T), lambda b: (b, 0, 0)),    # mask
                weight_spec((D, 3 * D)), weight_spec((1, 3 * D)),
                weight_spec((D, D)), weight_spec((1, D)),
                weight_spec((1, D)), weight_spec((1, D)),
                weight_spec((D, D)), weight_spec((1, D)),
                weight_spec((Ds, 2 * D)), weight_spec((1, 2 * D)),
                weight_spec((D, D)), weight_spec((1, D)),
                weight_spec((1, D)), weight_spec((1, D)),
                weight_spec((D, F)), weight_spec((1, F)),
                weight_spec((F, D)), weight_spec((1, D)),
                weight_spec((1, D)), weight_spec((1, D)),
            ],
            out_specs=pl.BlockSpec((1, T, D), lambda b: (b, 0, 0)),
        ),
        compiler_params=pltpu.CompilerParams(
            dimension_semantics=("parallel",)),
    )(
        tgt.astype(jnp.float32), src.astype(jnp.float32), mask_f,
        wqkv1, bqkv1, wo1, bo1, ln1g, ln1b,
        wq2, bq2, wkv2, bkv2, wo2, bo2, ln2g, ln2b,
        wf1, bf1, wf2, bf2, ln3g, ln3b,
    )
    return out


def transformer_decoder_layer_reference(tgt, src, tgt_mask, params, head_num):
    """Pure-JAX reference matching the PyTorch eval-mode forward."""
    D = tgt.shape[-1]
    hd = D // head_num
    temperature = float(D) ** 0.5

    def linear(x, w, b):                      # x @ W^T + b  (PyTorch Linear)
        return jnp.einsum("bti,oi->bto", x, w) + b

    def mha(q_in, kv_in, pre, mask):
        b, qlen, klen = q_in.shape[0], q_in.shape[1], kv_in.shape[1]
        q = linear(q_in, params[pre + "_wq"], params[pre + "_bq"])
        k = linear(kv_in, params[pre + "_wk"], params[pre + "_bk"])
        v = linear(kv_in, params[pre + "_wv"], params[pre + "_bv"])
        q = q.reshape(b, qlen, head_num, hd).transpose(0, 2, 1, 3)
        k = k.reshape(b, klen, head_num, hd).transpose(0, 2, 1, 3)
        v = v.reshape(b, klen, head_num, hd).transpose(0, 2, 1, 3)
        attn = jnp.einsum("bhqd,bhkd->bhqk", q, k) / temperature
        if mask is not None:
            attn = jnp.where(mask[:, None, :, :], -jnp.inf, attn)
        attn = jax.nn.softmax(attn, axis=-1)
        out = jnp.einsum("bhqk,bhkd->bhqd", attn, v)
        out = out.transpose(0, 2, 1, 3).reshape(b, qlen, D)
        return linear(out, params[pre + "_wo"], params[pre + "_bo"])

    def ln(x, g, b, eps=1e-5):
        mu = jnp.mean(x, axis=-1, keepdims=True)
        var = jnp.mean((x - mu) ** 2, axis=-1, keepdims=True)
        return (x - mu) / jnp.sqrt(var + eps) * g + b

    att = mha(tgt, tgt, "sa", tgt_mask)
    out = ln(att + tgt, params["ln1_g"], params["ln1_b"])
    att = mha(tgt, src, "ca", None)                           # q = tgt, per the module
    out = ln(att + out, params["ln2_g"], params["ln2_b"])
    h = jax.nn.relu(jnp.einsum("btd,fd->btf", out, params["ff_w1"]) + params["ff_b1"])
    ff = jax.nn.relu(jnp.einsum("btf,df->btd", h, params["ff_w2"]) + params["ff_b2"])
    return ln(ff + out, params["ln3_g"], params["ln3_b"])


def make_params(key, input_size, src_size, filter_size):
    D, Ds, F = input_size, src_size, filter_size
    ks = jax.random.split(key, 13)

    def lin(k, out_dim, in_dim):
        kw, kb = jax.random.split(k)
        bound = 1.0 / (in_dim ** 0.5)
        w = jax.random.uniform(kw, (out_dim, in_dim), jnp.float32, -bound, bound)
        b = jax.random.uniform(kb, (out_dim,), jnp.float32, -bound, bound)
        return w, b

    def ln_p(k, dim):
        kg, kb = jax.random.split(k)
        return (1.0 + 0.1 * jax.random.normal(kg, (dim,), jnp.float32),
                0.1 * jax.random.normal(kb, (dim,), jnp.float32))

    p = {}
    p["sa_wq"], p["sa_bq"] = lin(ks[0], D, D)
    p["sa_wk"], p["sa_bk"] = lin(ks[1], D, D)
    p["sa_wv"], p["sa_bv"] = lin(ks[2], D, D)
    p["sa_wo"], p["sa_bo"] = lin(ks[3], D, D)
    p["ln1_g"], p["ln1_b"] = ln_p(ks[4], D)
    p["ca_wq"], p["ca_bq"] = lin(ks[5], D, D)
    p["ca_wk"], p["ca_bk"] = lin(ks[6], D, Ds)
    p["ca_wv"], p["ca_bv"] = lin(ks[7], D, Ds)
    p["ca_wo"], p["ca_bo"] = lin(ks[8], D, D)
    p["ln2_g"], p["ln2_b"] = ln_p(ks[9], D)
    p["ff_w1"], p["ff_b1"] = lin(ks[10], F, D)
    p["ff_w2"], p["ff_b2"] = lin(ks[11], D, F)
    p["ln3_g"], p["ln3_b"] = ln_p(ks[12], D)
    return p


if __name__ == "__main__":
    key = jax.random.PRNGKey(0)
    k_tgt, k_src, k_p = jax.random.split(key, 3)

    B, T, S = 2, 8, 16
    input_size, src_size, filter_size, head_num = 32, 32, 64, 4

    tgt = jax.random.normal(k_tgt, (B, T, input_size), jnp.float32)
    src = jax.random.normal(k_src, (B, S, src_size), jnp.float32)
    # causal mask: True == position is masked (cannot attend)
    causal = jnp.triu(jnp.ones((T, T), jnp.bool_), k=1)
    tgt_mask = jnp.broadcast_to(causal, (B, T, T))

    params = make_params(k_p, input_size, src_size, filter_size)

    fwd = jax.jit(functools.partial(transformer_decoder_layer_pallas,
                                    params=params, head_num=head_num))
    out = fwd(tgt, src, tgt_mask)
    out = jax.block_until_ready(out)

    ref = transformer_decoder_layer_reference(tgt, src, tgt_mask, params, head_num)
    assert out.shape == (B, T, input_size), out.shape
    max_err = float(jnp.max(jnp.abs(out - ref)))
    assert jnp.allclose(out, ref, atol=1e-4, rtol=1e-4), max_err

    print("KERNEL_OK")
</pallas_src>

<mosaic_0001>
module attributes {stable_mosaic.version = 11 : i64} {
  func.func @_decoder_layer_kernel(%arg0: i32, %arg1: memref<1x8x32xf32, #tpu.memory_space<vmem>>, %arg2: memref<1x16x32xf32, #tpu.memory_space<vmem>>, %arg3: memref<1x8x8xf32, #tpu.memory_space<vmem>>, %arg4: memref<32x96xf32, #tpu.memory_space<vmem>>, %arg5: memref<1x96xf32, #tpu.memory_space<vmem>>, %arg6: memref<32x32xf32, #tpu.memory_space<vmem>>, %arg7: memref<1x32xf32, #tpu.memory_space<vmem>>, %arg8: memref<1x32xf32, #tpu.memory_space<vmem>>, %arg9: memref<1x32xf32, #tpu.memory_space<vmem>>, %arg10: memref<32x32xf32, #tpu.memory_space<vmem>>, %arg11: memref<1x32xf32, #tpu.memory_space<vmem>>, %arg12: memref<32x64xf32, #tpu.memory_space<vmem>>, %arg13: memref<1x64xf32, #tpu.memory_space<vmem>>, %arg14: memref<32x32xf32, #tpu.memory_space<vmem>>, %arg15: memref<1x32xf32, #tpu.memory_space<vmem>>, %arg16: memref<1x32xf32, #tpu.memory_space<vmem>>, %arg17: memref<1x32xf32, #tpu.memory_space<vmem>>, %arg18: memref<32x64xf32, #tpu.memory_space<vmem>>, %arg19: memref<1x64xf32, #tpu.memory_space<vmem>>, %arg20: memref<64x32xf32, #tpu.memory_space<vmem>>, %arg21: memref<1x32xf32, #tpu.memory_space<vmem>>, %arg22: memref<1x32xf32, #tpu.memory_space<vmem>>, %arg23: memref<1x32xf32, #tpu.memory_space<vmem>>, %arg24: memref<1x8x32xf32, #tpu.memory_space<vmem>>) attributes {dimension_semantics = [#tpu.dimension_semantics<parallel>], iteration_bounds = array<i64: 2>, scalar_prefetch = 0 : i64, scratch_operands = 0 : i64, tpu.core_type = #tpu.core_type<tc>, window_params = [{transform_indices = @transform_0, window_bounds = array<i64: 1, 8, 32>}, {transform_indices = @transform_1, window_bounds = array<i64: 1, 16, 32>}, {transform_indices = @transform_2, window_bounds = array<i64: 1, 8, 8>}, {pipeline_mode = #tpu.pipeline_mode<synchronous>, transform_indices = @transform_3, window_bounds = array<i64: 32, 96>}, {pipeline_mode = #tpu.pipeline_mode<synchronous>, transform_indices = @transform_4, window_bounds = array<i64: 1, 96>}, {pipeline_mode = #tpu.pipeline_mode<synchronous>, transform_indices = @transform_5, window_bounds = array<i64: 32, 32>}, {pipeline_mode = #tpu.pipeline_mode<synchronous>, transform_indices = @transform_6, window_bounds = array<i64: 1, 32>}, {pipeline_mode = #tpu.pipeline_mode<synchronous>, transform_indices = @transform_7, window_bounds = array<i64: 1, 32>}, {pipeline_mode = #tpu.pipeline_mode<synchronous>, transform_indices = @transform_8, window_bounds = array<i64: 1, 32>}, {pipeline_mode = #tpu.pipeline_mode<synchronous>, transform_indices = @transform_9, window_bounds = array<i64: 32, 32>}, {pipeline_mode = #tpu.pipeline_mode<synchronous>, transform_indices = @transform_10, window_bounds = array<i64: 1, 32>}, {pipeline_mode = #tpu.pipeline_mode<synchronous>, transform_indices = @transform_11, window_bounds = array<i64: 32, 64>}, {pipeline_mode = #tpu.pipeline_mode<synchronous>, transform_indices = @transform_12, window_bounds = array<i64: 1, 64>}, {pipeline_mode = #tpu.pipeline_mode<synchronous>, transform_indices = @transform_13, window_bounds = array<i64: 32, 32>}, {pipeline_mode = #tpu.pipeline_mode<synchronous>, transform_indices = @transform_14, window_bounds = array<i64: 1, 32>}, {pipeline_mode = #tpu.pipeline_mode<synchronous>, transform_indices = @transform_15, window_bounds = array<i64: 1, 32>}, {pipeline_mode = #tpu.pipeline_mode<synchronous>, transform_indices = @transform_16, window_bounds = array<i64: 1, 32>}, {pipeline_mode = #tpu.pipeline_mode<synchronous>, transform_indices = @transform_17, window_bounds = array<i64: 32, 64>}, {pipeline_mode = #tpu.pipeline_mode<synchronous>, transform_indices = @transform_18, window_bounds = array<i64: 1, 64>}, {pipeline_mode = #tpu.pipeline_mode<synchronous>, transform_indices = @transform_19, window_bounds = array<i64: 64, 32>}, {pipeline_mode = #tpu.pipeline_mode<synchronous>, transform_indices = @transform_20, window_bounds = array<i64: 1, 32>}, {pipeline_mode = #tpu.pipeline_mode<synchronous>, transform_indices = @transform_21, window_bounds = array<i64: 1, 32>}, {pipeline_mode = #tpu.pipeline_mode<synchronous>, transform_indices = @transform_22, window_bounds = array<i64: 1, 32>}, {transform_indices = @transform_23, window_bounds = array<i64: 1, 8, 32>}]} {
    %c0 = arith.constant 0 : index
    %c0_0 = arith.constant 0 : index
    %c0_1 = arith.constant 0 : index
    %0 = vector.load %arg1[%c0, %c0_0, %c0_1] : memref<1x8x32xf32, #tpu.memory_space<vmem>>, vector<1x8x32xf32>
    %1 = vector.shape_cast %0 : vector<1x8x32xf32> to vector<8x32xf32>
    %c0_2 = arith.constant 0 : index
    %c0_3 = arith.constant 0 : index
    %c0_4 = arith.constant 0 : index
    %2 = vector.load %arg2[%c0_2, %c0_3, %c0_4] : memref<1x16x32xf32, #tpu.memory_space<vmem>>, vector<1x16x32xf32>
    %3 = vector.shape_cast %2 : vector<1x16x32xf32> to vector<16x32xf32>
    %c0_5 = arith.constant 0 : index
    %c0_6 = arith.constant 0 : index
    %c0_7 = arith.constant 0 : index
    %4 = vector.load %arg3[%c0_5, %c0_6, %c0_7] : memref<1x8x8xf32, #tpu.memory_space<vmem>>, vector<1x8x8xf32>
    %5 = vector.shape_cast %4 : vector<1x8x8xf32> to vector<8x8xf32>
    %c0_8 = arith.constant 0 : index
    %c0_9 = arith.constant 0 : index
    %6 = vector.load %arg4[%c0_8, %c0_9] : memref<32x96xf32, #tpu.memory_space<vmem>>, vector<32x96xf32>
    %cst = arith.constant dense<0.000000e+00> : vector<8x96xf32>
    %7 = tpu.matmul %1, %6, %cst {dimension_numbers = #tpu.dot_dimension_numbers<[1], [0], [0], [1], [0, 0, 1, 1], [], []>} : vector<8x32xf32>, vector<32x96xf32>, vector<8x96xf32> -> vector<8x96xf32>
    %c0_10 = arith.constant 0 : index
    %c0_11 = arith.constant 0 : index
    %8 = vector.load %arg5[%c0_10, %c0_11] : memref<1x96xf32, #tpu.memory_space<vmem>>, vector<1x96xf32>
    %9 = vector.broadcast %8 : vector<1x96xf32> to vector<8x96xf32>
    %10 = arith.addf %7, %9 : vector<8x96xf32>
    %11 = vector.extract_strided_slice %10 {offsets = [0, 0], sizes = [8, 32], strides = [1, 1]} : vector<8x96xf32> to vector<8x32xf32>
    %12 = vector.extract_strided_slice %10 {offsets = [0, 32], sizes = [8, 32], strides = [1, 1]} : vector<8x96xf32> to vector<8x32xf32>
    %13 = vector.extract_strided_slice %10 {offsets = [0, 64], sizes = [8, 32], strides = [1, 1]} : vector<8x96xf32> to vector<8x32xf32>
    %c0_12 = arith.constant 0 : index
    %c0_13 = arith.constant 0 : index
    %14 = vector.load %arg7[%c0_12, %c0_13] : memref<1x32xf32, #tpu.memory_space<vmem>>, vector<1x32xf32>
    %15 = vector.extract_strided_slice %11 {offsets = [0, 0], sizes = [8, 8], strides = [1, 1]} : vector<8x32xf32> to vector<8x8xf32>
    %16 = vector.extract_strided_slice %12 {offsets = [0, 0], sizes = [8, 8], strides = [1, 1]} : vector<8x32xf32> to vector<8x8xf32>
    %17 = vector.extract_strided_slice %13 {offsets = [0, 0], sizes = [8, 8], strides = [1, 1]} : vector<8x32xf32> to vector<8x8xf32>
    %cst_14 = arith.constant dense<0.000000e+00> : vector<8x8xf32>
    %18 = tpu.matmul %15, %16, %cst_14 {dimension_numbers = #tpu.dot_dimension_numbers<[1], [1], [0], [0], [0, 0, 1, 0], [], []>} : vector<8x8xf32>, vector<8x8xf32>, vector<8x8xf32> -> vector<8x8xf32>
    %cst_15 = arith.constant 0.176776692 : f32
    %19 = vector.broadcast %cst_15 : f32 to vector<8x8xf32>
    %20 = arith.mulf %18, %19 : vector<8x8xf32>
    %cst_16 = arith.constant 1.000000e+30 : f32
    %21 = vector.broadcast %cst_16 : f32 to vector<8x8xf32>
    %22 = arith.mulf %5, %21 : vector<8x8xf32>
    %23 = arith.subf %20, %22 : vector<8x8xf32>
    %cst_17 = arith.constant dense<0xFF800000> : vector<8xf32>
    %24 = vector.multi_reduction <maximumf>, %23, %cst_17 [1] : vector<8x8xf32> to vector<8xf32>
    %25 = vector.shape_cast %24 : vector<8xf32> to vector<8x1xf32>
    %26 = vector.broadcast %25 : vector<8x1xf32> to vector<8x8xf32>
    %27 = arith.subf %23, %26 : vector<8x8xf32>
    %28 = math.exp %27 : vector<8x8xf32>
    %cst_18 = arith.constant dense<0.000000e+00> : vector<8xf32>
    %29 = vector.multi_reduction <add>, %28, %cst_18 [1] : vector<8x8xf32> to vector<8xf32>
    %30 = vector.shape_cast %29 : vector<8xf32> to vector<8x1xf32>
    %31 = vector.broadcast %30 : vector<8x1xf32> to vector<8x8xf32>
    %32 = arith.divf %28, %31 : vector<8x8xf32>
    %cst_19 = arith.constant dense<0.000000e+00> : vector<8x8xf32>
    %33 = tpu.matmul %32, %17, %cst_19 {dimension_numbers = #tpu.dot_dimension_numbers<[1], [0], [0], [1], [0, 0, 1, 1], [], []>} : vector<8x8xf32>, vector<8x8xf32>, vector<8x8xf32> -> vector<8x8xf32>
    %c0_20 = arith.constant 0 : index
    %c0_21 = arith.constant 0 : index
    %34 = vector.load %arg6[%c0_20, %c0_21] : memref<32x32xf32, #tpu.memory_space<vmem>>, vector<8x32xf32>
    %cst_22 = arith.constant dense<0.000000e+00> : vector<8x32xf32>
    %35 = tpu.matmul %33, %34, %cst_22 {dimension_numbers = #tpu.dot_dimension_numbers<[1], [0], [0], [1], [0, 0, 1, 1], [], []>} : vector<8x8xf32>, vector<8x32xf32>, vector<8x32xf32> -> vector<8x32xf32>
    %36 = vector.extract_strided_slice %11 {offsets = [0, 8], sizes = [8, 8], strides = [1, 1]} : vector<8x32xf32> to vector<8x8xf32>
    %37 = vector.extract_strided_slice %12 {offsets = [0, 8], sizes = [8, 8], strides = [1, 1]} : vector<8x32xf32> to vector<8x8xf32>
    %38 = vector.extract_strided_slice %13 {offsets = [0, 8], sizes = [8, 8], strides = [1, 1]} : vector<8x32xf32> to vector<8x8xf32>
    %cst_23 = arith.constant dense<0.000000e+00> : vector<8x8xf32>
    %39 = tpu.matmul %36, %37, %cst_23 {dimension_numbers = #tpu.dot_dimension_numbers<[1], [1], [0], [0], [0, 0, 1, 0], [], []>} : vector<8x8xf32>, vector<8x8xf32>, vector<8x8xf32> -> vector<8x8xf32>
    %cst_24 = arith.constant 0.176776692 : f32
    %40 = vector.broadcast %cst_24 : f32 to vector<8x8xf32>
    %41 = arith.mulf %39, %40 : vector<8x8xf32>
    %cst_25 = arith.constant 1.000000e+30 : f32
    %42 = vector.broadcast %cst_25 : f32 to vector<8x8xf32>
    %43 = arith.mulf %5, %42 : vector<8x8xf32>
    %44 = arith.subf %41, %43 : vector<8x8xf32>
    %cst_26 = arith.constant dense<0xFF800000> : vector<8xf32>
    %45 = vector.multi_reduction <maximumf>, %44, %cst_26 [1] : vector<8x8xf32> to vector<8xf32>
    %46 = vector.shape_cast %45 : vector<8xf32> to vector<8x1xf32>
    %47 = vector.broadcast %46 : vector<8x1xf32> to vector<8x8xf32>
    %48 = arith.subf %44, %47 : vector<8x8xf32>
    %49 = math.exp %48 : vector<8x8xf32>
    %cst_27 = arith.constant dense<0.000000e+00> : vector<8xf32>
    %50 = vector.multi_reduction <add>, %49, %cst_27 [1] : vector<8x8xf32> to vector<8xf32>
    %51 = vector.shape_cast %50 : vector<8xf32> to vector<8x1xf32>
    %52 = vector.broadcast %51 : vector<8x1xf32> to vector<8x8xf32>
    %53 = arith.divf %49, %52 : vector<8x8xf32>
    %cst_28 = arith.constant dense<0.000000e+00> : vector<8x8xf32>
    %54 = tpu.matmul %53, %38, %cst_28 {dimension_numbers = #tpu.dot_dimension_numbers<[1], [0], [0], [1], [0, 0, 1, 1], [], []>} : vector<8x8xf32>, vector<8x8xf32>, vector<8x8xf32> -> vector<8x8xf32>
    %c8 = arith.constant 8 : index
    %c0_29 = arith.constant 0 : index
    %55 = vector.load %arg6[%c8, %c0_29] : memref<32x32xf32, #tpu.memory_space<vmem>>, vector<8x32xf32>
    %cst_30 = arith.constant dense<0.000000e+00> : vector<8x32xf32>
    %56 = tpu.matmul %54, %55, %cst_30 {dimension_numbers = #tpu.dot_dimension_numbers<[1], [0], [0], [1], [0, 0, 1, 1], [], []>} : vector<8x8xf32>, vector<8x32xf32>, vector<8x32xf32> -> vector<8x32xf32>
    %57 = arith.addf %35, %56 : vector<8x32xf32>
    %58 = vector.extract_strided_slice %11 {offsets = [0, 16], sizes = [8, 8], strides = [1, 1]} : vector<8x32xf32> to vector<8x8xf32>
    %59 = vector.extract_strided_slice %12 {offsets = [0, 16], sizes = [8, 8], strides = [1, 1]} : vector<8x32xf32> to vector<8x8xf32>
    %60 = vector.extract_strided_slice %13 {offsets = [0, 16], sizes = [8, 8], strides = [1, 1]} : vector<8x32xf32> to vector<8x8xf32>
    %cst_31 = arith.constant dense<0.000000e+00> : vector<8x8xf32>
    %61 = tpu.matmul %58, %59, %cst_31 {dimension_numbers = #tpu.dot_dimension_numbers<[1], [1], [0], [0], [0, 0, 1, 0], [], []>} : vector<8x8xf32>, vector<8x8xf32>, vector<8x8xf32> -> vector<8x8xf32>
    %cst_32 = arith.constant 0.176776692 : f32
    %62 = vector.broadcast %cst_32 : f32 to vector<8x8xf32>
    %63 = arith.mulf %61, %62 : vector<8x8xf32>
    %cst_33 = arith.constant 1.000000e+30 : f32
    %64 = vector.broadcast %cst_33 : f32 to vector<8x8xf32>
    %65 = arith.mulf %5, %64 : vector<8x8xf32>
    %66 = arith.subf %63, %65 : vector<8x8xf32>
    %cst_34 = arith.constant dense<0xFF800000> : vector<8xf32>
    %67 = vector.multi_reduction <maximumf>, %66, %cst_34 [1] : vector<8x8xf32> to vector<8xf32>
    %68 = vector.shape_cast %67 : vector<8xf32> to vector<8x1xf32>
    %69 = vector.broadcast %68 : vector<8x1xf32> to vector<8x8xf32>
    %70 = arith.subf %66, %69 : vector<8x8xf32>
    %71 = math.exp %70 : vector<8x8xf32>
    %cst_35 = arith.constant dense<0.000000e+00> : vector<8xf32>
    %72 = vector.multi_reduction <add>, %71, %cst_35 [1] : vector<8x8xf32> to vector<8xf32>
    %73 = vector.shape_cast %72 : vector<8xf32> to vector<8x1xf32>
    %74 = vector.broadcast %73 : vector<8x1xf32> to vector<8x8xf32>
    %75 = arith.divf %71, %74 : vector<8x8xf32>
    %cst_36 = arith.constant dense<0.000000e+00> : vector<8x8xf32>
    %76 = tpu.matmul %75, %60, %cst_36 {dimension_numbers = #tpu.dot_dimension_numbers<[1], [0], [0], [1], [0, 0, 1, 1], [], []>} : vector<8x8xf32>, vector<8x8xf32>, vector<8x8xf32> -> vector<8x8xf32>
    %c16 = arith.constant 16 : index
    %c0_37 = arith.constant 0 : index
    %77 = vector.load %arg6[%c16, %c0_37] : memref<32x32xf32, #tpu.memory_space<vmem>>, vector<8x32xf32>
    %cst_38 = arith.constant dense<0.000000e+00> : vector<8x32xf32>
    %78 = tpu.matmul %76, %77, %cst_38 {dimension_numbers = #tpu.dot_dimension_numbers<[1], [0], [0], [1], [0, 0, 1, 1], [], []>} : vector<8x8xf32>, vector<8x32xf32>, vector<8x32xf32> -> vector<8x32xf32>
    %79 = arith.addf %57, %78 : vector<8x32xf32>
    %80 = vector.extract_strided_slice %11 {offsets = [0, 24], sizes = [8, 8], strides = [1, 1]} : vector<8x32xf32> to vector<8x8xf32>
    %81 = vector.extract_strided_slice %12 {offsets = [0, 24], sizes = [8, 8], strides = [1, 1]} : vector<8x32xf32> to vector<8x8xf32>
    %82 = vector.extract_strided_slice %13 {offsets = [0, 24], sizes = [8, 8], strides = [1, 1]} : vector<8x32xf32> to vector<8x8xf32>
    %cst_39 = arith.constant dense<0.000000e+00> : vector<8x8xf32>
    %83 = tpu.matmul %80, %81, %cst_39 {dimension_numbers = #tpu.dot_dimension_numbers<[1], [1], [0], [0], [0, 0, 1, 0], [], []>} : vector<8x8xf32>, vector<8x8xf32>, vector<8x8xf32> -> vector<8x8xf32>
    %cst_40 = arith.constant 0.176776692 : f32
    %84 = vector.broadcast %cst_40 : f32 to vector<8x8xf32>
    %85 = arith.mulf %83, %84 : vector<8x8xf32>
    %cst_41 = arith.constant 1.000000e+30 : f32
    %86 = vector.broadcast %cst_41 : f32 to vector<8x8xf32>
    %87 = arith.mulf %5, %86 : vector<8x8xf32>
    %88 = arith.subf %85, %87 : vector<8x8xf32>
    %cst_42 = arith.constant dense<0xFF800000> : vector<8xf32>
    %89 = vector.multi_reduction <maximumf>, %88, %cst_42 [1] : vector<8x8xf32> to vector<8xf32>
    %90 = vector.shape_cast %89 : vector<8xf32> to vector<8x1xf32>
    %91 = vector.broadcast %90 : vector<8x1xf32> to vector<8x8xf32>
    %92 = arith.subf %88, %91 : vector<8x8xf32>
    %93 = math.exp %92 : vector<8x8xf32>
    %cst_43 = arith.constant dense<0.000000e+00> : vector<8xf32>
    %94 = vector.multi_reduction <add>, %93, %cst_43 [1] : vector<8x8xf32> to vector<8xf32>
    %95 = vector.shape_cast %94 : vector<8xf32> to vector<8x1xf32>
    %96 = vector.broadcast %95 : vector<8x1xf32> to vector<8x8xf32>
    %97 = arith.divf %93, %96 : vector<8x8xf32>
    %cst_44 = arith.constant dense<0.000000e+00> : vector<8x8xf32>
    %98 = tpu.matmul %97, %82, %cst_44 {dimension_numbers = #tpu.dot_dimension_numbers<[1], [0], [0], [1], [0, 0, 1, 1], [], []>} : vector<8x8xf32>, vector<8x8xf32>, vector<8x8xf32> -> vector<8x8xf32>
    %c24 = arith.constant 24 : index
    %c0_45 = arith.constant 0 : index
    %99 = vector.load %arg6[%c24, %c0_45] : memref<32x32xf32, #tpu.memory_space<vmem>>, vector<8x32xf32>
    %cst_46 = arith.constant dense<0.000000e+00> : vector<8x32xf32>
    %100 = tpu.matmul %98, %99, %cst_46 {dimension_numbers = #tpu.dot_dimension_numbers<[1], [0], [0], [1], [0, 0, 1, 1], [], []>} : vector<8x8xf32>, vector<8x32xf32>, vector<8x32xf32> -> vector<8x32xf32>
    %101 = arith.addf %79, %100 : vector<8x32xf32>
    %102 = vector.broadcast %14 : vector<1x32xf32> to vector<8x32xf32>
    %103 = arith.addf %101, %102 : vector<8x32xf32>
    %104 = arith.addf %103, %1 : vector<8x32xf32>
    %c0_47 = arith.constant 0 : index
    %c0_48 = arith.constant 0 : index
    %105 = vector.load %arg8[%c0_47, %c0_48] : memref<1x32xf32, #tpu.memory_space<vmem>>, vector<1x32xf32>
    %c0_49 = arith.constant 0 : index
    %c0_50 = arith.constant 0 : index
    %106 = vector.load %arg9[%c0_49, %c0_50] : memref<1x32xf32, #tpu.memory_space<vmem>>, vector<1x32xf32>
    %cst_51 = arith.constant dense<0.000000e+00> : vector<8xf32>
    %107 = vector.multi_reduction <add>, %104, %cst_51 [1] : vector<8x32xf32> to vector<8xf32>
    %108 = vector.shape_cast %107 : vector<8xf32> to vector<8x1xf32>
    %cst_52 = arith.constant 3.200000e+01 : f32
    %109 = vector.broadcast %cst_52 : f32 to vector<8x1xf32>
    %110 = arith.divf %108, %109 : vector<8x1xf32>
    %111 = vector.broadcast %110 : vector<8x1xf32> to vector<8x32xf32>
    %112 = arith.subf %104, %111 : vector<8x32xf32>
    %113 = arith.mulf %112, %112 : vector<8x32xf32>
    %cst_53 = arith.constant dense<0.000000e+00> : vector<8xf32>
    %114 = vector.multi_reduction <add>, %113, %cst_53 [1] : vector<8x32xf32> to vector<8xf32>
    %115 = vector.shape_cast %114 : vector<8xf32> to vector<8x1xf32>
    %cst_54 = arith.constant 3.200000e+01 : f32
    %116 = vector.broadcast %cst_54 : f32 to vector<8x1xf32>
    %117 = arith.divf %115, %116 : vector<8x1xf32>
    %cst_55 = arith.constant 9.99999974E-6 : f32
    %118 = vector.broadcast %cst_55 : f32 to vector<8x1xf32>
    %119 = arith.addf %117, %118 : vector<8x1xf32>
    %120 = math.rsqrt %119 : vector<8x1xf32>
    %121 = vector.broadcast %120 : vector<8x1xf32> to vector<8x32xf32>
    %122 = arith.mulf %112, %121 : vector<8x32xf32>
    %123 = vector.broadcast %105 : vector<1x32xf32> to vector<8x32xf32>
    %124 = arith.mulf %122, %123 : vector<8x32xf32>
    %125 = vector.broadcast %106 : vector<1x32xf32> to vector<8x32xf32>
    %126 = arith.addf %124, %125 : vector<8x32xf32>
    %c0_56 = arith.constant 0 : index
    %c0_57 = arith.constant 0 : index
    %127 = vector.load %arg10[%c0_56, %c0_57] : memref<32x32xf32, #tpu.memory_space<vmem>>, vector<32x32xf32>
    %cst_58 = arith.constant dense<0.000000e+00> : vector<8x32xf32>
    %128 = tpu.matmul %1, %127, %cst_58 {dimension_numbers = #tpu.dot_dimension_numbers<[1], [0], [0], [1], [0, 0, 1, 1], [], []>} : vector<8x32xf32>, vector<32x32xf32>, vector<8x32xf32> -> vector<8x32xf32>
    %c0_59 = arith.constant 0 : index
    %c0_60 = arith.constant 0 : index
    %129 = vector.load %arg11[%c0_59, %c0_60] : memref<1x32xf32, #tpu.memory_space<vmem>>, vector<1x32xf32>
    %130 = vector.broadcast %129 : vector<1x32xf32> to vector<8x32xf32>
    %131 = arith.addf %128, %130 : vector<8x32xf32>
    %c0_61 = arith.constant 0 : index
    %c0_62 = arith.constant 0 : index
    %132 = vector.load %arg12[%c0_61, %c0_62] : memref<32x64xf32, #tpu.memory_space<vmem>>, vector<32x64xf32>
    %cst_63 = arith.constant dense<0.000000e+00> : vector<16x64xf32>
    %133 = tpu.matmul %3, %132, %cst_63 {dimension_numbers = #tpu.dot_dimension_numbers<[1], [0], [0], [1], [0, 0, 1, 1], [], []>} : vector<16x32xf32>, vector<32x64xf32>, vector<16x64xf32> -> vector<16x64xf32>
    %c0_64 = arith.constant 0 : index
    %c0_65 = arith.constant 0 : index
    %134 = vector.load %arg13[%c0_64, %c0_65] : memref<1x64xf32, #tpu.memory_space<vmem>>, vector<1x64xf32>
    %135 = vector.broadcast %134 : vector<1x64xf32> to vector<16x64xf32>
    %136 = arith.addf %133, %135 : vector<16x64xf32>
    %137 = vector.extract_strided_slice %136 {offsets = [0, 0], sizes = [16, 32], strides = [1, 1]} : vector<16x64xf32> to vector<16x32xf32>
    %138 = vector.extract_strided_slice %136 {offsets = [0, 32], sizes = [16, 32], strides = [1, 1]} : vector<16x64xf32> to vector<16x32xf32>
    %c0_66 = arith.constant 0 : index
    %c0_67 = arith.constant 0 : index
    %139 = vector.load %arg15[%c0_66, %c0_67] : memref<1x32xf32, #tpu.memory_space<vmem>>, vector<1x32xf32>
    %140 = vector.extract_strided_slice %131 {offsets = [0, 0], sizes = [8, 8], strides = [1, 1]} : vector<8x32xf32> to vector<8x8xf32>
    %141 = vector.extract_strided_slice %137 {offsets = [0, 0], sizes = [16, 8], strides = [1, 1]} : vector<16x32xf32> to vector<16x8xf32>
    %142 = vector.extract_strided_slice %138 {offsets = [0, 0], sizes = [16, 8], strides = [1, 1]} : vector<16x32xf32> to vector<16x8xf32>
    %cst_68 = arith.constant dense<0.000000e+00> : vector<8x16xf32>
    %143 = tpu.matmul %140, %141, %cst_68 {dimension_numbers = #tpu.dot_dimension_numbers<[1], [1], [0], [0], [0, 0, 1, 0], [], []>} : vector<8x8xf32>, vector<16x8xf32>, vector<8x16xf32> -> vector<8x16xf32>
    %cst_69 = arith.constant 0.176776692 : f32
    %144 = vector.broadcast %cst_69 : f32 to vector<8x16xf32>
    %145 = arith.mulf %143, %144 : vector<8x16xf32>
    %cst_70 = arith.constant dense<0xFF800000> : vector<8xf32>
    %146 = vector.multi_reduction <maximumf>, %145, %cst_70 [1] : vector<8x16xf32> to vector<8xf32>
    %147 = vector.shape_cast %146 : vector<8xf32> to vector<8x1xf32>
    %148 = vector.broadcast %147 : vector<8x1xf32> to vector<8x16xf32>
    %149 = arith.subf %145, %148 : vector<8x16xf32>
    %150 = math.exp %149 : vector<8x16xf32>
    %cst_71 = arith.constant dense<0.000000e+00> : vector<8xf32>
    %151 = vector.multi_reduction <add>, %150, %cst_71 [1] : vector<8x16xf32> to vector<8xf32>
    %152 = vector.shape_cast %151 : vector<8xf32> to vector<8x1xf32>
    %153 = vector.broadcast %152 : vector<8x1xf32> to vector<8x16xf32>
    %154 = arith.divf %150, %153 : vector<8x16xf32>
    %cst_72 = arith.constant dense<0.000000e+00> : vector<8x8xf32>
    %155 = tpu.matmul %154, %142, %cst_72 {dimension_numbers = #tpu.dot_dimension_numbers<[1], [0], [0], [1], [0, 0, 1, 1], [], []>} : vector<8x16xf32>, vector<16x8xf32>, vector<8x8xf32> -> vector<8x8xf32>
    %c0_73 = arith.constant 0 : index
    %c0_74 = arith.constant 0 : index
    %156 = vector.load %arg14[%c0_73, %c0_74] : memref<32x32xf32, #tpu.memory_space<vmem>>, vector<8x32xf32>
    %cst_75 = arith.constant dense<0.000000e+00> : vector<8x32xf32>
    %157 = tpu.matmul %155, %156, %cst_75 {dimension_numbers = #tpu.dot_dimension_numbers<[1], [0], [0], [1], [0, 0, 1, 1], [], []>} : vector<8x8xf32>, vector<8x32xf32>, vector<8x32xf32> -> vector<8x32xf32>
    %158 = vector.extract_strided_slice %131 {offsets = [0, 8], sizes = [8, 8], strides = [1, 1]} : vector<8x32xf32> to vector<8x8xf32>
    %159 = vector.extract_strided_slice %137 {offsets = [0, 8], sizes = [16, 8], strides = [1, 1]} : vector<16x32xf32> to vector<16x8xf32>
    %160 = vector.extract_strided_slice %138 {offsets = [0, 8], sizes = [16, 8], strides = [1, 1]} : vector<16x32xf32> to vector<16x8xf32>
    %cst_76 = arith.constant dense<0.000000e+00> : vector<8x16xf32>
    %161 = tpu.matmul %158, %159, %cst_76 {dimension_numbers = #tpu.dot_dimension_numbers<[1], [1], [0], [0], [0, 0, 1, 0], [], []>} : vector<8x8xf32>, vector<16x8xf32>, vector<8x16xf32> -> vector<8x16xf32>
    %cst_77 = arith.constant 0.176776692 : f32
    %162 = vector.broadcast %cst_77 : f32 to vector<8x16xf32>
    %163 = arith.mulf %161, %162 : vector<8x16xf32>
    %cst_78 = arith.constant dense<0xFF800000> : vector<8xf32>
    %164 = vector.multi_reduction <maximumf>, %163, %cst_78 [1] : vector<8x16xf32> to vector<8xf32>
    %165 = vector.shape_cast %164 : vector<8xf32> to vector<8x1xf32>
    %166 = vector.broadcast %165 : vector<8x1xf32> to vector<8x16xf32>
    %167 = arith.subf %163, %166 : vector<8x16xf32>
    %168 = math.exp %167 : vector<8x16xf32>
    %cst_79 = arith.constant dense<0.000000e+00> : vector<8xf32>
    %169 = vector.multi_reduction <add>, %168, %cst_79 [1] : vector<8x16xf32> to vector<8xf32>
    %170 = vector.shape_cast %169 : vector<8xf32> to vector<8x1xf32>
    %171 = vector.broadcast %170 : vector<8x1xf32> to vector<8x16xf32>
    %172 = arith.divf %168, %171 : vector<8x16xf32>
    %cst_80 = arith.constant dense<0.000000e+00> : vector<8x8xf32>
    %173 = tpu.matmul %172, %160, %cst_80 {dimension_numbers = #tpu.dot_dimension_numbers<[1], [0], [0], [1], [0, 0, 1, 1], [], []>} : vector<8x16xf32>, vector<16x8xf32>, vector<8x8xf32> -> vector<8x8xf32>
    %c8_81 = arith.constant 8 : index
    %c0_82 = arith.constant 0 : index
    %174 = vector.load %arg14[%c8_81, %c0_82] : memref<32x32xf32, #tpu.memory_space<vmem>>, vector<8x32xf32>
    %cst_83 = arith.constant dense<0.000000e+00> : vector<8x32xf32>
    %175 = tpu.matmul %173, %174, %cst_83 {dimension_numbers = #tpu.dot_dimension_numbers<[1], [0], [0], [1], [0, 0, 1, 1], [], []>} : vector<8x8xf32>, vector<8x32xf32>, vector<8x32xf32> -> vector<8x32xf32>
    %176 = arith.addf %157, %175 : vector<8x32xf32>
    %177 = vector.extract_strided_slice %131 {offsets = [0, 16], sizes = [8, 8], strides = [1, 1]} : vector<8x32xf32> to vector<8x8xf32>
    %178 = vector.extract_strided_slice %137 {offsets = [0, 16], sizes = [16, 8], strides = [1, 1]} : vector<16x32xf32> to vector<16x8xf32>
    %179 = vector.extract_strided_slice %138 {offsets = [0, 16], sizes = [16, 8], strides = [1, 1]} : vector<16x32xf32> to vector<16x8xf32>
    %cst_84 = arith.constant dense<0.000000e+00> : vector<8x16xf32>
    %180 = tpu.matmul %177, %178, %cst_84 {dimension_numbers = #tpu.dot_dimension_numbers<[1], [1], [0], [0], [0, 0, 1, 0], [], []>} : vector<8x8xf32>, vector<16x8xf32>, vector<8x16xf32> -> vector<8x16xf32>
    %cst_85 = arith.constant 0.176776692 : f32
    %181 = vector.broadcast %cst_85 : f32 to vector<8x16xf32>
    %182 = arith.mulf %180, %181 : vector<8x16xf32>
    %cst_86 = arith.constant dense<0xFF800000> : vector<8xf32>
    %183 = vector.multi_reduction <maximumf>, %182, %cst_86 [1] : vector<8x16xf32> to vector<8xf32>
    %184 = vector.shape_cast %183 : vector<8xf32> to vector<8x1xf32>
    %185 = vector.broadcast %184 : vector<8x1xf32> to vector<8x16xf32>
    %186 = arith.subf %182, %185 : vector<8x16xf32>
    %187 = math.exp %186 : vector<8x16xf32>
    %cst_87 = arith.constant dense<0.000000e+00> : vector<8xf32>
    %188 = vector.multi_reduction <add>, %187, %cst_87 [1] : vector<8x16xf32> to vector<8xf32>
    %189 = vector.shape_cast %188 : vector<8xf32> to vector<8x1xf32>
    %190 = vector.broadcast %189 : vector<8x1xf32> to vector<8x16xf32>
    %191 = arith.divf %187, %190 : vector<8x16xf32>
    %cst_88 = arith.constant dense<0.000000e+00> : vector<8x8xf32>
    %192 = tpu.matmul %191, %179, %cst_88 {dimension_numbers = #tpu.dot_dimension_numbers<[1], [0], [0], [1], [0, 0, 1, 1], [], []>} : vector<8x16xf32>, vector<16x8xf32>, vector<8x8xf32> -> vector<8x8xf32>
    %c16_89 = arith.constant 16 : index
    %c0_90 = arith.constant 0 : index
    %193 = vector.load %arg14[%c16_89, %c0_90] : memref<32x32xf32, #tpu.memory_space<vmem>>, vector<8x32xf32>
    %cst_91 = arith.constant dense<0.000000e+00> : vector<8x32xf32>
    %194 = tpu.matmul %192, %193, %cst_91 {dimension_numbers = #tpu.dot_dimension_numbers<[1], [0], [0], [1], [0, 0, 1, 1], [], []>} : vector<8x8xf32>, vector<8x32xf32>, vector<8x32xf32> -> vector<8x32xf32>
    %195 = arith.addf %176, %194 : vector<8x32xf32>
    %196 = vector.extract_strided_slice %131 {offsets = [0, 24], sizes = [8, 8], strides = [1, 1]} : vector<8x32xf32> to vector<8x8xf32>
    %197 = vector.extract_strided_slice %137 {offsets = [0, 24], sizes = [16, 8], strides = [1, 1]} : vector<16x32xf32> to vector<16x8xf32>
    %198 = vector.extract_strided_slice %138 {offsets = [0, 24], sizes = [16, 8], strides = [1, 1]} : vector<16x32xf32> to vector<16x8xf32>
    %cst_92 = arith.constant dense<0.000000e+00> : vector<8x16xf32>
    %199 = tpu.matmul %196, %197, %cst_92 {dimension_numbers = #tpu.dot_dimension_numbers<[1], [1], [0], [0], [0, 0, 1, 0], [], []>} : vector<8x8xf32>, vector<16x8xf32>, vector<8x16xf32> -> vector<8x16xf32>
    %cst_93 = arith.constant 0.176776692 : f32
    %200 = vector.broadcast %cst_93 : f32 to vector<8x16xf32>
    %201 = arith.mulf %199, %200 : vector<8x16xf32>
    %cst_94 = arith.constant dense<0xFF800000> : vector<8xf32>
    %202 = vector.multi_reduction <maximumf>, %201, %cst_94 [1] : vector<8x16xf32> to vector<8xf32>
    %203 = vector.shape_cast %202 : vector<8xf32> to vector<8x1xf32>
    %204 = vector.broadcast %203 : vector<8x1xf32> to vector<8x16xf32>
    %205 = arith.subf %201, %204 : vector<8x16xf32>
    %206 = math.exp %205 : vector<8x16xf32>
    %cst_95 = arith.constant dense<0.000000e+00> : vector<8xf32>
    %207 = vector.multi_reduction <add>, %206, %cst_95 [1] : vector<8x16xf32> to vector<8xf32>
    %208 = vector.shape_cast %207 : vector<8xf32> to vector<8x1xf32>
    %209 = vector.broadcast %208 : vector<8x1xf32> to vector<8x16xf32>
    %210 = arith.divf %206, %209 : vector<8x16xf32>
    %cst_96 = arith.constant dense<0.000000e+00> : vector<8x8xf32>
    %211 = tpu.matmul %210, %198, %cst_96 {dimension_numbers = #tpu.dot_dimension_numbers<[1], [0], [0], [1], [0, 0, 1, 1], [], []>} : vector<8x16xf32>, vector<16x8xf32>, vector<8x8xf32> -> vector<8x8xf32>
    %c24_97 = arith.constant 24 : index
    %c0_98 = arith.constant 0 : index
    %212 = vector.load %arg14[%c24_97, %c0_98] : memref<32x32xf32, #tpu.memory_space<vmem>>, vector<8x32xf32>
    %cst_99 = arith.constant dense<0.000000e+00> : vector<8x32xf32>
    %213 = tpu.matmul %211, %212, %cst_99 {dimension_numbers = #tpu.dot_dimension_numbers<[1], [0], [0], [1], [0, 0, 1, 1], [], []>} : vector<8x8xf32>, vector<8x32xf32>, vector<8x32xf32> -> vector<8x32xf32>
    %214 = arith.addf %195, %213 : vector<8x32xf32>
    %215 = vector.broadcast %139 : vector<1x32xf32> to vector<8x32xf32>
    %216 = arith.addf %214, %215 : vector<8x32xf32>
    %217 = arith.addf %216, %126 : vector<8x32xf32>
    %c0_100 = arith.constant 0 : index
    %c0_101 = arith.constant 0 : index
    %218 = vector.load %arg16[%c0_100, %c0_101] : memref<1x32xf32, #tpu.memory_space<vmem>>, vector<1x32xf32>
    %c0_102 = arith.constant 0 : index
    %c0_103 = arith.constant 0 : index
    %219 = vector.load %arg17[%c0_102, %c0_103] : memref<1x32xf32, #tpu.memory_space<vmem>>, vector<1x32xf32>
    %cst_104 = arith.constant dense<0.000000e+00> : vector<8xf32>
    %220 = vector.multi_reduction <add>, %217, %cst_104 [1] : vector<8x32xf32> to vector<8xf32>
    %221 = vector.shape_cast %220 : vector<8xf32> to vector<8x1xf32>
    %cst_105 = arith.constant 3.200000e+01 : f32
    %222 = vector.broadcast %cst_105 : f32 to vector<8x1xf32>
    %223 = arith.divf %221, %222 : vector<8x1xf32>
    %224 = vector.broadcast %223 : vector<8x1xf32> to vector<8x32xf32>
    %225 = arith.subf %217, %224 : vector<8x32xf32>
    %226 = arith.mulf %225, %225 : vector<8x32xf32>
    %cst_106 = arith.constant dense<0.000000e+00> : vector<8xf32>
    %227 = vector.multi_reduction <add>, %226, %cst_106 [1] : vector<8x32xf32> to vector<8xf32>
    %228 = vector.shape_cast %227 : vector<8xf32> to vector<8x1xf32>
    %cst_107 = arith.constant 3.200000e+01 : f32
    %229 = vector.broadcast %cst_107 : f32 to vector<8x1xf32>
    %230 = arith.divf %228, %229 : vector<8x1xf32>
    %cst_108 = arith.constant 9.99999974E-6 : f32
    %231 = vector.broadcast %cst_108 : f32 to vector<8x1xf32>
    %232 = arith.addf %230, %231 : vector<8x1xf32>
    %233 = math.rsqrt %232 : vector<8x1xf32>
    %234 = vector.broadcast %233 : vector<8x1xf32> to vector<8x32xf32>
    %235 = arith.mulf %225, %234 : vector<8x32xf32>
    %236 = vector.broadcast %218 : vector<1x32xf32> to vector<8x32xf32>
    %237 = arith.mulf %235, %236 : vector<8x32xf32>
    %238 = vector.broadcast %219 : vector<1x32xf32> to vector<8x32xf32>
    %239 = arith.addf %237, %238 : vector<8x32xf32>
    %c0_109 = arith.constant 0 : index
    %c0_110 = arith.constant 0 : index
    %240 = vector.load %arg18[%c0_109, %c0_110] : memref<32x64xf32, #tpu.memory_space<vmem>>, vector<32x64xf32>
    %cst_111 = arith.constant dense<0.000000e+00> : vector<8x64xf32>
    %241 = tpu.matmul %239, %240, %cst_111 {dimension_numbers = #tpu.dot_dimension_numbers<[1], [0], [0], [1], [0, 0, 1, 1], [], []>} : vector<8x32xf32>, vector<32x64xf32>, vector<8x64xf32> -> vector<8x64xf32>
    %c0_112 = arith.constant 0 : index
    %c0_113 = arith.constant 0 : index
    %242 = vector.load %arg19[%c0_112, %c0_113] : memref<1x64xf32, #tpu.memory_space<vmem>>, vector<1x64xf32>
    %243 = vector.broadcast %242 : vector<1x64xf32> to vector<8x64xf32>
    %244 = arith.addf %241, %243 : vector<8x64xf32>
    %cst_114 = arith.constant 0.000000e+00 : f32
    %245 = vector.broadcast %cst_114 : f32 to vector<8x64xf32>
    %246 = arith.maximumf %244, %245 : vector<8x64xf32>
    %c0_115 = arith.constant 0 : index
    %c0_116 = arith.constant 0 : index
    %247 = vector.load %arg20[%c0_115, %c0_116] : memref<64x32xf32, #tpu.memory_space<vmem>>, vector<64x32xf32>
    %cst_117 = arith.constant dense<0.000000e+00> : vector<8x32xf32>
    %248 = tpu.matmul %246, %247, %cst_117 {dimension_numbers = #tpu.dot_dimension_numbers<[1], [0], [0], [1], [0, 0, 1, 1], [], []>} : vector<8x64xf32>, vector<64x32xf32>, vector<8x32xf32> -> vector<8x32xf32>
    %c0_118 = arith.constant 0 : index
    %c0_119 = arith.constant 0 : index
    %249 = vector.load %arg21[%c0_118, %c0_119] : memref<1x32xf32, #tpu.memory_space<vmem>>, vector<1x32xf32>
    %250 = vector.broadcast %249 : vector<1x32xf32> to vector<8x32xf32>
    %251 = arith.addf %248, %250 : vector<8x32xf32>
    %cst_120 = arith.constant 0.000000e+00 : f32
    %252 = vector.broadcast %cst_120 : f32 to vector<8x32xf32>
    %253 = arith.maximumf %251, %252 : vector<8x32xf32>
    %254 = arith.addf %253, %239 : vector<8x32xf32>
    %c0_121 = arith.constant 0 : index
    %c0_122 = arith.constant 0 : index
    %255 = vector.load %arg22[%c0_121, %c0_122] : memref<1x32xf32, #tpu.memory_space<vmem>>, vector<1x32xf32>
    %c0_123 = arith.constant 0 : index
    %c0_124 = arith.constant 0 : index
    %256 = vector.load %arg23[%c0_123, %c0_124] : memref<1x32xf32, #tpu.memory_space<vmem>>, vector<1x32xf32>
    %cst_125 = arith.constant dense<0.000000e+00> : vector<8xf32>
    %257 = vector.multi_reduction <add>, %254, %cst_125 [1] : vector<8x32xf32> to vector<8xf32>
    %258 = vector.shape_cast %257 : vector<8xf32> to vector<8x1xf32>
    %cst_126 = arith.constant 3.200000e+01 : f32
    %259 = vector.broadcast %cst_126 : f32 to vector<8x1xf32>
    %260 = arith.divf %258, %259 : vector<8x1xf32>
    %261 = vector.broadcast %260 : vector<8x1xf32> to vector<8x32xf32>
    %262 = arith.subf %254, %261 : vector<8x32xf32>
    %263 = arith.mulf %262, %262 : vector<8x32xf32>
    %cst_127 = arith.constant dense<0.000000e+00> : vector<8xf32>
    %264 = vector.multi_reduction <add>, %263, %cst_127 [1] : vector<8x32xf32> to vector<8xf32>
    %265 = vector.shape_cast %264 : vector<8xf32> to vector<8x1xf32>
    %cst_128 = arith.constant 3.200000e+01 : f32
    %266 = vector.broadcast %cst_128 : f32 to vector<8x1xf32>
    %267 = arith.divf %265, %266 : vector<8x1xf32>
    %cst_129 = arith.constant 9.99999974E-6 : f32
    %268 = vector.broadcast %cst_129 : f32 to vector<8x1xf32>
    %269 = arith.addf %267, %268 : vector<8x1xf32>
    %270 = math.rsqrt %269 : vector<8x1xf32>
    %271 = vector.broadcast %270 : vector<8x1xf32> to vector<8x32xf32>
    %272 = arith.mulf %262, %271 : vector<8x32xf32>
    %273 = vector.broadcast %255 : vector<1x32xf32> to vector<8x32xf32>
    %274 = arith.mulf %272, %273 : vector<8x32xf32>
    %275 = vector.broadcast %256 : vector<1x32xf32> to vector<8x32xf32>
    %276 = arith.addf %274, %275 : vector<8x32xf32>
    %c0_130 = arith.constant 0 : index
    %c0_131 = arith.constant 0 : index
    %c0_132 = arith.constant 0 : index
    %277 = vector.load %arg24[%c0_130, %c0_131, %c0_132] : memref<1x8x32xf32, #tpu.memory_space<vmem>>, vector<1x8x32xf32>
    %278 = vector.shape_cast %277 : vector<1x8x32xf32> to vector<8x32xf32>
    %279 = vector.shape_cast %276 : vector<8x32xf32> to vector<1x8x32xf32>
    tpu.vector_store %arg24[%c0_130, %c0_131, %c0_132], %279 {strides = array<i32>} : memref<1x8x32xf32, #tpu.memory_space<vmem>>, vector<1x8x32xf32>,
    return
  }
  func.func @transform_0(%arg0: i32) -> (i32, i32, i32) {
    %c0_i32 = arith.constant 0 : i32
    %c0_i32_0 = arith.constant 0 : i32
    %c0_i32_1 = arith.constant 0 : i32
    return %arg0, %c0_i32, %c0_i32_0 : i32, i32, i32
  }
  func.func @transform_1(%arg0: i32) -> (i32, i32, i32) {
    %c0_i32 = arith.constant 0 : i32
    %c0_i32_0 = arith.constant 0 : i32
    %c0_i32_1 = arith.constant 0 : i32
    return %arg0, %c0_i32, %c0_i32_0 : i32, i32, i32
  }
  func.func @transform_2(%arg0: i32) -> (i32, i32, i32) {
    %c0_i32 = arith.constant 0 : i32
    %c0_i32_0 = arith.constant 0 : i32
    %c0_i32_1 = arith.constant 0 : i32
    return %arg0, %c0_i32, %c0_i32_0 : i32, i32, i32
  }
  func.func @transform_3(%arg0: i32) -> (i32, i32) {
    %c0_i32 = arith.constant 0 : i32
    %c0_i32_0 = arith.constant 0 : i32
    %c0_i32_1 = arith.constant 0 : i32
    return %c0_i32, %c0_i32_0 : i32, i32
  }
  func.func @transform_4(%arg0: i32) -> (i32, i32) {
    %c0_i32 = arith.constant 0 : i32
    %c0_i32_0 = arith.constant 0 : i32
    %c0_i32_1 = arith.constant 0 : i32
    return %c0_i32, %c0_i32_0 : i32, i32
  }
  func.func @transform_5(%arg0: i32) -> (i32, i32) {
    %c0_i32 = arith.constant 0 : i32
    %c0_i32_0 = arith.constant 0 : i32
    %c0_i32_1 = arith.constant 0 : i32
    return %c0_i32, %c0_i32_0 : i32, i32
  }
  func.func @transform_6(%arg0: i32) -> (i32, i32) {
    %c0_i32 = arith.constant 0 : i32
    %c0_i32_0 = arith.constant 0 : i32
    %c0_i32_1 = arith.constant 0 : i32
    return %c0_i32, %c0_i32_0 : i32, i32
  }
  func.func @transform_7(%arg0: i32) -> (i32, i32) {
    %c0_i32 = arith.constant 0 : i32
    %c0_i32_0 = arith.constant 0 : i32
    %c0_i32_1 = arith.constant 0 : i32
    return %c0_i32, %c0_i32_0 : i32, i32
  }
  func.func @transform_8(%arg0: i32) -> (i32, i32) {
    %c0_i32 = arith.constant 0 : i32
    %c0_i32_0 = arith.constant 0 : i32
    %c0_i32_1 = arith.constant 0 : i32
    return %c0_i32, %c0_i32_0 : i32, i32
  }
  func.func @transform_9(%arg0: i32) -> (i32, i32) {
    %c0_i32 = arith.constant 0 : i32
    %c0_i32_0 = arith.constant 0 : i32
    %c0_i32_1 = arith.constant 0 : i32
    return %c0_i32, %c0_i32_0 : i32, i32
  }
  func.func @transform_10(%arg0: i32) -> (i32, i32) {
    %c0_i32 = arith.constant 0 : i32
    %c0_i32_0 = arith.constant 0 : i32
    %c0_i32_1 = arith.constant 0 : i32
    return %c0_i32, %c0_i32_0 : i32, i32
  }
  func.func @transform_11(%arg0: i32) -> (i32, i32) {
    %c0_i32 = arith.constant 0 : i32
    %c0_i32_0 = arith.constant 0 : i32
    %c0_i32_1 = arith.constant 0 : i32
    return %c0_i32, %c0_i32_0 : i32, i32
  }
  func.func @transform_12(%arg0: i32) -> (i32, i32) {
    %c0_i32 = arith.constant 0 : i32
    %c0_i32_0 = arith.constant 0 : i32
    %c0_i32_1 = arith.constant 0 : i32
    return %c0_i32, %c0_i32_0 : i32, i32
  }
  func.func @transform_13(%arg0: i32) -> (i32, i32) {
    %c0_i32 = arith.constant 0 : i32
    %c0_i32_0 = arith.constant 0 : i32
    %c0_i32_1 = arith.constant 0 : i32
    return %c0_i32, %c0_i32_0 : i32, i32
  }
  func.func @transform_14(%arg0: i32) -> (i32, i32) {
    %c0_i32 = arith.constant 0 : i32
    %c0_i32_0 = arith.constant 0 : i32
    %c0_i32_1 = arith.constant 0 : i32
    return %c0_i32, %c0_i32_0 : i32, i32
  }
  func.func @transform_15(%arg0: i32) -> (i32, i32) {
    %c0_i32 = arith.constant 0 : i32
    %c0_i32_0 = arith.constant 0 : i32
    %c0_i32_1 = arith.constant 0 : i32
    return %c0_i32, %c0_i32_0 : i32, i32
  }
  func.func @transform_16(%arg0: i32) -> (i32, i32) {
    %c0_i32 = arith.constant 0 : i32
    %c0_i32_0 = arith.constant 0 : i32
    %c0_i32_1 = arith.constant 0 : i32
    return %c0_i32, %c0_i32_0 : i32, i32
  }
  func.func @transform_17(%arg0: i32) -> (i32, i32) {
    %c0_i32 = arith.constant 0 : i32
    %c0_i32_0 = arith.constant 0 : i32
    %c0_i32_1 = arith.constant 0 : i32
    return %c0_i32, %c0_i32_0 : i32, i32
  }
  func.func @transform_18(%arg0: i32) -> (i32, i32) {
    %c0_i32 = arith.constant 0 : i32
    %c0_i32_0 = arith.constant 0 : i32
    %c0_i32_1 = arith.constant 0 : i32
    return %c0_i32, %c0_i32_0 : i32, i32
  }
  func.func @transform_19(%arg0: i32) -> (i32, i32) {
    %c0_i32 = arith.constant 0 : i32
    %c0_i32_0 = arith.constant 0 : i32
    %c0_i32_1 = arith.constant 0 : i32
    return %c0_i32, %c0_i32_0 : i32, i32
  }
  func.func @transform_20(%arg0: i32) -> (i32, i32) {
    %c0_i32 = arith.constant 0 : i32
    %c0_i32_0 = arith.constant 0 : i32
    %c0_i32_1 = arith.constant 0 : i32
    return %c0_i32, %c0_i32_0 : i32, i32
  }
  func.func @transform_21(%arg0: i32) -> (i32, i32) {
    %c0_i32 = arith.constant 0 : i32
    %c0_i32_0 = arith.constant 0 : i32
    %c0_i32_1 = arith.constant 0 : i32
    return %c0_i32, %c0_i32_0 : i32, i32
  }
  func.func @transform_22(%arg0: i32) -> (i32, i32) {
    %c0_i32 = arith.constant 0 : i32
    %c0_i32_0 = arith.constant 0 : i32
    %c0_i32_1 = arith.constant 0 : i32
    return %c0_i32, %c0_i32_0 : i32, i32
  }
  func.func @transform_23(%arg0: i32) -> (i32, i32, i32) {
    %c0_i32 = arith.constant 0 : i32
    %c0_i32_0 = arith.constant 0 : i32
    %c0_i32_1 = arith.constant 0 : i32
    return %arg0, %c0_i32, %c0_i32_0 : i32, i32, i32
  }
}

</mosaic_0001>

<bundles_post_ra>
// kernel: transformer_decoder_layer_pallas.1
= control target key start
LH: loop header
LB: loop body
LE: loop exit
PB: predicated region body
PF: predicated region fallthrough
CT: control target
= control target key end

     0   :  { %s5408_s0 = inlined_call_operand.hbm [shape: f32[2,8,32], index: 0, kind: input, shape index: {}]   ;;  %s5409_s1 = inlined_call_operand.hbm [shape: f32[2,16,32], index: 1, kind: input, shape index: {}]   ;;  %s5410_s2 = inlined_call_operand.vmem [shape: f32[2,8,8], index: 2, kind: input, shape index: {}]   ;;  %s5411_s3 = inlined_call_operand.hbm [shape: f32[32,96], index: 3, kind: input, shape index: {}]   ;;  %s5412_s4 = inlined_call_operand.hbm [shape: f32[1,96], index: 4, kind: input, shape index: {}]   ;;  %s5413_s5 = inlined_call_operand.hbm [shape: f32[32,32], index: 5, kind: input, shape index: {}]   ;;  %s5414_s6 = inlined_call_operand.vmem [shape: f32[1,32], index: 6, kind: input, shape index: {}]   ;;  %s5415_s7 = inlined_call_operand.vmem [shape: f32[1,32], index: 7, kind: input, shape index: {}]   ;;  %s5416_s8 = inlined_call_operand.vmem [shape: f32[1,32], index: 8, kind: input, shape index: {}]   ;;  %s5417_s9 = inlined_call_operand.hbm [shape: f32[32,32], index: 9, kind: input, shape index: {}]   ;;  %s5418_s10 = inlined_call_operand.vmem [shape: f32[1,32], index: 10, kind: input, shape index: {}]   ;;  %s5419_s11 = inlined_call_operand.hbm [shape: f32[32,64], index: 11, kind: input, shape index: {}]   ;;  %s5420_s12 = inlined_call_operand.vmem [shape: f32[1,64], index: 12, kind: input, shape index: {}]   ;;  %s5421_s13 = inlined_call_operand.hbm [shape: f32[32,32], index: 13, kind: input, shape index: {}]   ;;  %s5422_s14 = inlined_call_operand.vmem [shape: f32[1,32], index: 14, kind: input, shape index: {}]   ;;  %s5423_s15 = inlined_call_operand.vmem [shape: f32[1,32], index: 15, kind: input, shape index: {}]   ;;  %s5424_s16 = inlined_call_operand.vmem [shape: f32[1,32], index: 16, kind: input, shape index: {}]   ;;  %s5425_s17 = inlined_call_operand.hbm [shape: f32[32,64], index: 17, kind: input, shape index: {}]   ;;  %s5426_s18 = inlined_call_operand.vmem [shape: f32[1,64], index: 18, kind: input, shape index: {}]   ;;  %s5427_s19 = inlined_call_operand.vmem [shape: f32[64,32], index: 19, kind: input, shape index: {}]   ;;  %s5428_s20 = inlined_call_operand.vmem [shape: f32[1,32], index: 20, kind: input, shape index: {}]   ;;  %s5429_s21 = inlined_call_operand.vmem [shape: f32[1,32], index: 21, kind: input, shape index: {}]   ;;  %s5430_s22 = inlined_call_operand.vmem [shape: f32[1,32], index: 22, kind: input, shape index: {}]   ;;  %s5431_s23 = inlined_call_operand.hbm [shape: f32[2,8,32], index: 23, kind: output, shape index: {}]  }
   0x1   :  { %5447 = sst [smem:[#allocation25_spill]] %s5408_s0 }
   0x2   :  { %5448 = sst [smem:[#allocation26_spill]] %s5409_s1 }
   0x3   :  { %5449 = sst [smem:[#allocation27_spill]] %s5410_s2 }
   0x4   :  { %5450 = sst [smem:[#allocation28_spill]] %s5411_s3 }
   0x5   :  { %5451 = sst [smem:[#allocation29_spill]] %s5412_s4 }
   0x6   :  { %5452 = sst [smem:[#allocation30_spill]] %s5413_s5 }
   0x7   :  { %5453 = sst [smem:[#allocation31_spill]] %s5414_s6 }
   0x8   :  { %5454 = sst [smem:[#allocation32_spill]] %s5415_s7 }
   0x9   :  { %5455 = sst [smem:[#allocation33_spill]] %s5416_s8 }
   0xa   :  { %5456 = sst [smem:[#allocation34_spill]] %s5417_s9 }
   0xb   :  { %5457 = sst [smem:[#allocation35_spill]] %s5419_s11 }
   0xc   :  { %5458 = sst [smem:[#allocation36_spill]] %s5421_s13 }
   0xd   :  { %5459 = sst [smem:[#allocation37_spill]] %s5423_s15 }
   0xe   :  { %5460 = sst [smem:[#allocation38_spill]] %s5424_s16 }
   0xf   :  { %5461 = sst [smem:[#allocation39_spill]] %s5425_s17 }
  0x10   :  { %5462 = sst [smem:[#allocation40_spill]] %s5426_s18 }
  0x11   :  { %5463 = sst [smem:[#allocation41_spill]] %s5427_s19 }
  0x12   :  { %5464 = sst [smem:[#allocation42_spill]] %s5428_s20 }
  0x13   :  { %5465 = sst [smem:[#allocation43_spill]] %s5429_s21 }
  0x14   :  { %5466 = sst [smem:[#allocation44_spill]] %s5430_s22 }
  0x15   :  { %5467 = sst [smem:[#allocation45_spill]] %s5431_s23 }
  0x16   :  { %28 = vsyncpa [#allocation3], 0 }
  0x17   :  { %30 = vsyncpa [#allocation3 + $0x1], 0 }
  0x18   :  { %31 = vsyncpa [#allocation6], 0 }
  0x19   :  { %33 = vsyncpa [#allocation6 + $0x1], 0 }
  0x1a   :  { %34 = vsyncpa [#allocation9], 0 }
  0x1b   :  { %35 = vsyncpa [#allocation12], 0 }
  0x1c   :  { %36 = vsyncpa [#allocation15], 0 }
  0x1d   :  { %37 = vsyncpa [#allocation4], 0 }
  0x1e   :  { %39 = vsyncpa [#allocation4 + $0x1], 0  ;;  %s4706_s4 = smov 0   ;;  %s4708_s30 = smov 0  }
  0x1f   :  { %s4710_s24 = smov 0   ;;  %s4712_s25 = smov 0  }
  0x20 LB: > { %s4560_s5 = smov [#allocation7]   ;;  %s4727_s26 = sadd.s32 4294967295, %s4558_s25   ;;  %s4558_s25 = sphi %s4712_s25, %s5517_s25   ;;  %s4554_s24 = sphi %s4710_s24, %s5516_s24   ;;  %s4550_s30 = sphi %s4708_s30, %s5515_s30   ;;  %s4546_s4 = sphi %s4706_s4, %s5514_s4  }
  0x21   : > { %s586_s1 = sshll.u32 %s4560_s5, 4  ;;  %p3568_p0 = scmp.ge.s32.totalorder %s4558_s25, 1  ;;  %s4732_s1 = int_to_ptr.vmem [resolvable:$true] %s586_s1 }
  0x22   : > { %p5440_p1 = scmp.eq.s32.totalorder %s4727_s26, 0  ;;  %p574_p2 = scmp.lt.s32.totalorder %s4558_s25, 3 }
  0x23   : > { %s4561_s6 = smov [#allocation8]   ;;  %s4562_s28 = smov [#allocation11]  }
  0x24   : > { %p4734_p3 = pnand %p3568_p0, %p574_p2  ;;  %s600_s27 = sshll.u32 %s4561_s6, 4  ;;  %s4747_s27 = int_to_ptr.vmem [resolvable:$true] %s600_s27 }
  0x25   : > { %s632_s29 = sshll.u32 %s4562_s28, 4  ;;  %s5470_s5 = sld [smem:[#allocation28_spill]]  ;;  %s4749_s29 = int_to_ptr.vmem [resolvable:$true] %s632_s29 }
  0x26   : > { %s5468_s2 = scalar_select %p4734_p3, 1, 0 }
  0x27   : > { %p4039_p5 = pneg %p4734_p3 }
  0x29   : > { %p4743_p6 = pnand %p4039_p5, %p5440_p1 }
  0x2b   : > { %s4216_s23 = scalar_lea.hbm %s5470_s5, 512  ;;  %p4759_p8 = pneg %p4743_p6 }
  0x2c   : > { %p4217_p7 = scmp.ne.s32.totalorder %s5470_s5, %s4216_s23  ;;  %p4223_p11 = scmp.lt.u32.totalorder %s4216_s23, %s5470_s5 }
  0x2e   : > { %p4219_p9 = pnand %p4759_p8, %p4217_p7 }
  0x30   : > { %p4220_p10 = pneg %p4219_p9 }
  0x32   : > { %p4225_p12 = pnand %p4223_p11, %p4220_p10 }
  0x34   : > { %4228 = shalt.err (!%p4225_p12)
}
  0x35   : > { %s4229_s21 = scalar_lea.vmem %s4732_s1, 512  ;;  %p4237_p5 = scmp.lt.s32.totalorder %s4732_s1, %s4732_s1 }
  0x36   : > { %p4230_p13 = scmp.ne.s32.totalorder %s4732_s1, %s4229_s21  ;;  %p4238_p4 = scmp.lt.s32.totalorder %s4229_s21, %s4229_s21 }
  0x38   : > { %p4232_p0 = pnand %p4230_p13, %p4759_p8  ;;  %p4239_p7 = por %p4238_p4, %p4237_p5 }
  0x3a   : > { %p4233_p2 = pneg %p4232_p0 }
  0x3c   : > { %p4240_p9 = pnand %p4239_p7, %p4233_p2 }
  0x3e   : > { %4243 = shalt.err (!%p4240_p9)
}
  0x3f   : > { %s5442_s22 = smov 128   ;;  %s5443_s20 = smov 8  }
  0x40   : > { %4042 = dma.hbm_to_vmem [thread:$0]  (!%p4743_p6), %s5470_s5, 512, %s4732_s1, [#allocation6], %s5442_s22, %s5442_s22, %s5443_s20  }
  0x41   : > { %s5472_s18 = sld [smem:[#allocation29_spill]] }
  0x47   : > { %s4244_s21 = scalar_lea.hbm %s5472_s18, 16 }
  0x48   : > { %p4245_p4 = scmp.ne.s32.totalorder %s5472_s18, %s4244_s21  ;;  %p4251_p12 = scmp.lt.u32.totalorder %s4244_s21, %s5472_s18 }
  0x4a   : > { %p4247_p10 = pnand %p4245_p4, %p4759_p8 }
  0x4c   : > { %p4248_p11 = pneg %p4247_p10 }
  0x4e   : > { %p4253_p13 = pnand %p4251_p12, %p4248_p11 }
  0x50   : > { %4256 = shalt.err (!%p4253_p13)
}
  0x51   : > { %s4257_s1 = scalar_lea.vmem %s4747_s27, 16  ;;  %s4264_s15 = scalar_lea.vmem %s4747_s27, 32 }
  0x52   : > { %p4258_p0 = scmp.ne.s32.totalorder %s4747_s27, %s4257_s1  ;;  %p4265_p7 = scmp.lt.s32.totalorder %s4747_s27, %s4747_s27 }
  0x53   : > { %p4266_p9 = scmp.lt.s32.totalorder %s4264_s15, %s4257_s1 }
  0x54   : > { %p4260_p2 = pnand %p4258_p0, %p4759_p8 }
  0x55   : > { %p4267_p4 = por %p4266_p9, %p4265_p7 }
  0x56   : > { %p4261_p5 = pneg %p4260_p2 }
  0x58   : > { %p4268_p10 = pnand %p4267_p4, %p4261_p5 }
  0x5a   : > { %4271 = shalt.err (!%p4268_p10)
}
  0x5b   : > { %4045 = dma.hbm_to_vmem [thread:$0]  (!%p4743_p6), %s5472_s18, 16, %s4747_s27, [#allocation9]  }
  0x5c   : > { %s5473_s9 = sld [smem:[#allocation34_spill]] }
  0x62   : > { %s4272_s3 = scalar_lea.hbm %s5473_s9, 512 }
  0x63   : > { %p4273_p11 = scmp.ne.s32.totalorder %s5473_s9, %s4272_s3  ;;  %p4279_p0 = scmp.lt.u32.totalorder %s4272_s3, %s5473_s9 }
  0x65   : > { %p4275_p12 = pnand %p4273_p11, %p4759_p8 }
  0x67   : > { %p4276_p13 = pneg %p4275_p12 }
  0x69   : > { %p4281_p2 = pnand %p4279_p0, %p4276_p13 }
  0x6b   : > { %4284 = shalt.err (!%p4281_p2)
}
  0x6c   : > { %s4285_s27 = scalar_lea.vmem %s4749_s29, 512  ;;  %p4293_p4 = scmp.lt.s32.totalorder %s4749_s29, %s4749_s29 }
  0x6d   : > { %p4286_p5 = scmp.ne.s32.totalorder %s4749_s29, %s4285_s27  ;;  %p4294_p10 = scmp.lt.s32.totalorder %s4285_s27, %s4285_s27 }
  0x6f   : > { %p4288_p7 = pnand %p4286_p5, %p4759_p8  ;;  %p4295_p11 = por %p4294_p10, %p4293_p4 }
  0x71   : > { %p4289_p9 = pneg %p4288_p7 }
  0x73   : > { %p4296_p12 = pnand %p4295_p11, %p4289_p9 }
  0x75   : > { %4299 = shalt.err (!%p4296_p12)
}
  0x76   : > { %4051 = dma.hbm_to_vmem [thread:$0]  (!%p4743_p6), %s5473_s9, 512, %s4749_s29, [#allocation12], %s5442_s22, %s5442_s22, %s5443_s20  }
  0x77   : > { %s4565_s16 = smov [#allocation14]   ;;  %s4566_s23 = smov [#allocation10]  }
  0x78   : > { %s664_s19 = sshll.u32 %s4565_s16, 4  ;;  %s610_s3 = sshll.u32 %s4566_s23, 4  ;;  %s665_s19 = int_to_ptr.vmem [resolvable:$true] %s664_s19  ;;  %s611_s3 = int_to_ptr.vmem [resolvable:$true] %s610_s3 }
  0x79   : > { %s5474_s13 = sld [smem:[#allocation36_spill]] }
  0x7f   : > { %s4300_s21 = scalar_lea.hbm %s5474_s13, 512 }
  0x80   : > { %p4301_p13 = scmp.ne.s32.totalorder %s5474_s13, %s4300_s21  ;;  %p4307_p5 = scmp.lt.u32.totalorder %s4300_s21, %s5474_s13 }
  0x82   : > { %p4303_p0 = pnand %p4301_p13, %p4759_p8 }
  0x84   : > { %p4304_p2 = pneg %p4303_p0 }
  0x86   : > { %p4309_p7 = pnand %p4307_p5, %p4304_p2 }
  0x88   : > { %4312 = shalt.err (!%p4309_p7)
}
  0x89   : > { %s4313_s29 = scalar_lea.vmem %s665_s19, 512  ;;  %p4321_p11 = scmp.lt.s32.totalorder %s665_s19, %s665_s19 }
  0x8a   : > { %p4314_p9 = scmp.ne.s32.totalorder %s665_s19, %s4313_s29  ;;  %p4322_p12 = scmp.lt.s32.totalorder %s4313_s29, %s4313_s29 }
  0x8c   : > { %p4316_p4 = pnand %p4314_p9, %p4759_p8  ;;  %p4323_p1 = por %p4322_p12, %p4321_p11 }
  0x8e   : > { %p4317_p10 = pneg %p4316_p4 }
  0x90   : > { %p4324_p3 = pnand %p4323_p1, %p4317_p10 }
  0x92   : > { %4327 = shalt.err (!%p4324_p3)
}
  0x93   : > { %4057 = dma.hbm_to_vmem [thread:$0]  (!%p4743_p6), %s5474_s13, 512, %s665_s19, [#allocation15], %s5442_s22, %s5442_s22, %s5443_s20  }
  0x94   : > { %s5475_s0 = sld [smem:[#allocation30_spill]] }
  0x9a   : > { %s4328_s28 = scalar_lea.hbm %s5475_s0, 512 }
  0x9b   : > { %p4329_p1 = scmp.ne.s32.totalorder %s5475_s0, %s4328_s28  ;;  %p4335_p0 = scmp.lt.u32.totalorder %s4328_s28, %s5475_s0 }
  0x9d   : > { %p4331_p3 = pnand %p4329_p1, %p4759_p8 }
  0x9f   : > { %p4332_p13 = pneg %p4331_p3 }
  0xa1   : > { %p4337_p2 = pnand %p4335_p0, %p4332_p13 }
  0xa3   : > { %4340 = shalt.err (!%p4337_p2)
}
  0xa4   : > { %s4341_s29 = scalar_lea.vmem %s611_s3, 512  ;;  %p4349_p4 = scmp.lt.s32.totalorder %s611_s3, %s611_s3 }
  0xa5   : > { %p4342_p5 = scmp.ne.s32.totalorder %s611_s3, %s4341_s29  ;;  %p4350_p10 = scmp.lt.s32.totalorder %s4341_s29, %s4341_s29 }
  0xa7   : > { %p4344_p7 = pnand %p4342_p5, %p4759_p8  ;;  %p4351_p11 = por %p4350_p10, %p4349_p4 }
  0xa9   : > { %p4345_p9 = pneg %p4344_p7 }
  0xab   : > { %p4352_p12 = pnand %p4351_p11, %p4345_p9 }
  0xad   : > { %4355 = shalt.err (!%p4352_p12)
}
  0xae   : > { %4048 = dma.hbm_to_vmem [thread:$0]  (!%p4743_p6), %s5475_s0, 512, %s611_s3, [#allocation9], %s5442_s22, %s5442_s22, %s5443_s20  }
  0xaf   : > { %s4567_s8 = smov [#allocation13]   ;;  %s4568_s23 = smov [#allocation16]  }
  0xb0   : > { %s648_s16 = sshll.u32 %s4567_s8, 4  ;;  %s686_s28 = sshll.u32 %s4568_s23, 4  ;;  %s649_s16 = int_to_ptr.vmem [resolvable:$true] %s648_s16  ;;  %s687_s28 = int_to_ptr.vmem [resolvable:$true] %s686_s28 }
  0xb1   : > { %s5476_s11 = sld [smem:[#allocation35_spill]] }
  0xb7   : > { %s4356_s27 = scalar_lea.hbm %s5476_s11, 512 }
  0xb8   : > { %p4357_p1 = scmp.ne.s32.totalorder %s5476_s11, %s4356_s27  ;;  %p4363_p0 = scmp.lt.u32.totalorder %s4356_s27, %s5476_s11 }
  0xba   : > { %p4359_p3 = pnand %p4357_p1, %p4759_p8 }
  0xbc   : > { %p4360_p13 = pneg %p4359_p3 }
  0xbe   : > { %p4365_p2 = pnand %p4363_p0, %p4360_p13 }
  0xc0   : > { %4368 = shalt.err (!%p4365_p2)
}
  0xc1   : > { %s4369_s3 = scalar_lea.vmem %s649_s16, 512  ;;  %p4377_p4 = scmp.lt.s32.totalorder %s649_s16, %s649_s16 }
  0xc2   : > { %p4370_p5 = scmp.ne.s32.totalorder %s649_s16, %s4369_s3  ;;  %p4378_p10 = scmp.lt.s32.totalorder %s4369_s3, %s4369_s3 }
  0xc4   : > { %p4372_p7 = pnand %p4370_p5, %p4759_p8  ;;  %p4379_p11 = por %p4378_p10, %p4377_p4 }
  0xc6   : > { %p4373_p9 = pneg %p4372_p7 }
  0xc8   : > { %p4380_p12 = pnand %p4379_p11, %p4373_p9 }
  0xca   : > { %4383 = shalt.err (!%p4380_p12)
}
  0xcb   : > { %4054 = dma.hbm_to_vmem [thread:$0]  (!%p4743_p6), %s5476_s11, 512, %s649_s16, [#allocation12], %s5442_s22, %s5442_s22, %s5443_s20  }
  0xcc   : > { %s5477_s17 = sld [smem:[#allocation39_spill]] }
  0xd2   : > { %s4384_s21 = scalar_lea.hbm %s5477_s17, 512 }
  0xd3   : > { %p4385_p1 = scmp.ne.s32.totalorder %s5477_s17, %s4384_s21  ;;  %p4391_p0 = scmp.lt.u32.totalorder %s4384_s21, %s5477_s17 }
  0xd5   : > { %p4387_p3 = pnand %p4385_p1, %p4759_p8 }
  0xd7   : > { %p4388_p13 = pneg %p4387_p3 }
  0xd9   : > { %p4393_p2 = pnand %p4391_p0, %p4388_p13 }
  0xdb   : > { %4396 = shalt.err (!%p4393_p2)
}
  0xdc   : > { %s4397_s19 = scalar_lea.vmem %s687_s28, 512  ;;  %p4405_p4 = scmp.lt.s32.totalorder %s687_s28, %s687_s28 }
  0xdd   : > { %p4398_p5 = scmp.ne.s32.totalorder %s687_s28, %s4397_s19  ;;  %p4406_p10 = scmp.lt.s32.totalorder %s4397_s19, %s4397_s19 }
  0xdf   : > { %p4400_p7 = pnand %p4398_p5, %p4759_p8  ;;  %p4407_p11 = por %p4406_p10, %p4405_p4 }
  0xe1   : > { %p4401_p9 = pneg %p4400_p7 }
  0xe3   : > { %p4408_p12 = pnand %p4407_p11, %p4401_p9 }
  0xe5   : > { %4411 = shalt.err (!%p4408_p12)
}
  0xe6   : > { %4060 = dma.hbm_to_vmem [thread:$0]  (!%p4743_p6), %s5477_s17, 512, %s687_s28, [#allocation15], %s5442_s22, %s5442_s22, %s5443_s20  }
  0xe7   : > { %s3567_s7 = sadd.s32 4294967294, %s4558_s25   ;;  %s4919_s6 = sadd.s32 1, %s4558_s25  }
  0xe8   : > { %s52_s9 = sadd.s32 1, %s4554_s24  ;;  %s49_s5 = ssub.s32 %s4558_s25, %s4919_s6 }
  0xe9   : > { %p59_p8 = scmp.ne.s32.totalorder %s4554_s24, %s4550_s30  ;;  %p50_p1 = scmp.eq.s32.totalorder %s49_s5, 0 }
  0xea   : > { %p60_p3 = scmp.eq.s32.totalorder %s4558_s25, 0  ;;  %p65_p13 = scmp.ne.s32.totalorder %s4550_s30, %s4546_s4 }
  0xeb   : > { %p561_p0 = scmp.eq.s32.totalorder %s4727_s26, 1  ;;  %p5478_p5 = scmp.eq.s32.totalorder %s4727_s26, 0 }
  0xec   : > { %s4931_s8 = scalar_select %p50_p1, %s4554_s24, %s52_s9  }
  0xed   : > { %p61_p2 = por %p60_p3, %p59_p8  ;;  %p4935_p7 = por %p5478_p5, %p65_p13 }
  0xee   : > { %p4939_p6 = por %p561_p0, %p59_p8  ;;  %p567_p9 = scmp.eq.s32.totalorder %s3567_s7, 1 }
  0xef   : > { %p4079_p4 = scmp.lt.s32.totalorder %s4558_s25, 2  ;;  %s4945_s21 = sand.u32 1, %s4554_s24  }
  0xf0   : > { %s5480_s28 = scalar_select %p4939_p6, 1, 0 }
  0xf1   : > { %p4947_p10 = por %p567_p9, %p65_p13  ;;  %s3577_s27 = sshll.u32 %s4945_s21, 3 }
  0xf2   : > { %s3578_s15 = sshll.u32 %s4558_s25, 7  ;;  %s5482_s16 = sld [smem:[#allocation25_spill]] }
  0xf3   : > { %s5481_s1 = scalar_select %p4947_p10, 1, 0 }
  0xf4   : > { %s719_s7 = scalar_lea.vmem [#allocation2], %s3577_s27  ;;  %p4958_p11 = pnand %p4079_p4, %p61_p2 }
  0xf5   : > { %s726_s9 = sshll.u32 %s719_s7, 4  ;;  %s716_s20 = scalar_lea.sflag [#allocation3], %s4945_s21  ;;  %s4962_s9 = int_to_ptr.vmem [resolvable:$true] %s726_s9 }
  0xf6   : > { %p4414_p8 = pneg %p4958_p11 }
  0xf8   : > { %s4956_s3 = scalar_lea.hbm %s5482_s16, %s3578_s15  ;;  %s4417_s29 = scalar_lea.hbm %s5482_s16, 256 }
  0xf9   : > { %s4412_s0 = scalar_lea.hbm %s4956_s3, 128  ;;  %p4418_p13 = scmp.lt.u32.totalorder %s4956_s3, %s5482_s16 }
  0xfa   : > { %p4413_p12 = scmp.ne.s32.totalorder %s4956_s3, %s4412_s0  ;;  %p4419_p0 = scmp.lt.u32.totalorder %s4417_s29, %s4412_s0 }
  0xfb   : > { %p4421_p5 = scmp.lt.u32.totalorder %s4412_s0, %s4956_s3 }
  0xfc   : > { %p4415_p1 = pnand %p4414_p8, %p4413_p12  ;;  %p4420_p2 = por %p4419_p0, %p4418_p13 }
  0xfe   : > { %p4416_p3 = pneg %p4415_p1  ;;  %p4422_p9 = por %p4421_p5, %p4420_p2 }
 0x100   : > { %p4423_p4 = pnand %p4422_p9, %p4416_p3 }
 0x102   : > { %4426 = shalt.err (!%p4423_p4)
}
 0x103   : > { %s4427_s22 = scalar_lea.vmem %s4962_s9, 128  ;;  %s4569_s27 = smov [#allocation2]  }
 0x104   : > { %p4428_p12 = scmp.ne.s32.totalorder %s4962_s9, %s4427_s22  ;;  %s4432_s15 = sshll.u32 %s4569_s27, 4  ;;  %s4433_s15 = int_to_ptr.vmem [resolvable:$false] %s4432_s15 }
 0x105   : > { %s4434_s19 = scalar_lea.vmem %s4433_s15, 256  ;;  %p4435_p6 = scmp.lt.s32.totalorder %s4962_s9, %s4433_s15 }
 0x106   : > { %p4430_p1 = pnand %p4428_p12, %p4414_p8  ;;  %p4436_p13 = scmp.lt.s32.totalorder %s4434_s19, %s4427_s22 }
 0x108   : > { %p4431_p10 = pneg %p4430_p1  ;;  %p4437_p0 = por %p4436_p13, %p4435_p6 }
 0x10a   : > { %p4438_p2 = pnand %p4437_p0, %p4431_p10 }
 0x10c   : > { %4441 = shalt.err (!%p4438_p2)
}
 0x10d   : > { %4064 = dma.hbm_to_vmem [thread:$0]  (!%p4958_p11), %s4956_s3, 128, %s4962_s9, %s716_s20  }
 0x10e   : > { %s5484_s0 = sshll.u32 %s4945_s21, 4  ;;  %s733_s27 = sand.u32 1, %s4558_s25  }
 0x10f   : > { %s737_s29 = scalar_lea.vmem [#allocation5], %s5484_s0  ;;  %s3653_s15 = sshll.u32 %s4558_s25, 8 }
 0x110   : > { %s744_s7 = sshll.u32 %s737_s29, 4  ;;  %s5485_s11 = sld [smem:[#allocation26_spill]]  ;;  %s4994_s7 = int_to_ptr.vmem [resolvable:$true] %s744_s7 }
 0x111   : > { %s5002_s16 = scalar_lea.sflag [#allocation6], %s733_s27 }
 0x116   : > { %s5000_s13 = scalar_lea.hbm %s5485_s11, %s3653_s15  ;;  %s4447_s3 = scalar_lea.hbm %s5485_s11, 512 }
 0x117   : > { %s4442_s17 = scalar_lea.hbm %s5000_s13, 256  ;;  %p4448_p5 = scmp.lt.u32.totalorder %s5000_s13, %s5485_s11 }
 0x118   : > { %p4443_p6 = scmp.ne.s32.totalorder %s5000_s13, %s4442_s17  ;;  %p4449_p9 = scmp.lt.u32.totalorder %s4447_s3, %s4442_s17 }
 0x119   : > { %p4451_p12 = scmp.lt.u32.totalorder %s4442_s17, %s5000_s13 }
 0x11a   : > { %p4445_p10 = pnand %p4443_p6, %p4414_p8  ;;  %p4450_p4 = por %p4449_p9, %p4448_p5 }
 0x11c   : > { %p4446_p3 = pneg %p4445_p10  ;;  %p4452_p1 = por %p4451_p12, %p4450_p4 }
 0x11e   : > { %p4453_p13 = pnand %p4452_p1, %p4446_p3 }
 0x120   : > { %4456 = shalt.err (!%p4453_p13)
}
 0x121   : > { %s4457_s29 = scalar_lea.vmem %s4994_s7, 256  ;;  %s4570_s27 = smov [#allocation5]  }
 0x122   : > { %p4458_p0 = scmp.ne.s32.totalorder %s4994_s7, %s4457_s29  ;;  %s4462_s15 = sshll.u32 %s4570_s27, 4  ;;  %s4463_s15 = int_to_ptr.vmem [resolvable:$false] %s4462_s15 }
 0x123   : > { %s4464_s22 = scalar_lea.vmem %s4463_s15, 512  ;;  %p4465_p10 = scmp.lt.s32.totalorder %s4994_s7, %s4463_s15 }
 0x124   : > { %p4460_p2 = pnand %p4458_p0, %p4414_p8  ;;  %p4466_p5 = scmp.lt.s32.totalorder %s4464_s22, %s4457_s29 }
 0x126   : > { %p4461_p6 = pneg %p4460_p2  ;;  %p4467_p9 = por %p4466_p5, %p4465_p10 }
 0x128   : > { %p4468_p4 = pnand %p4467_p9, %p4461_p6 }
 0x12a   : > { %4471 = shalt.err (!%p4468_p4)
}
 0x12b   : > { %s5486_s17 = smov 8   ;;  %s5487_s19 = smov 128  }
 0x12c   : > { %4067 = dma.hbm_to_vmem [thread:$0]  (!%p4958_p11), %s5000_s13, 256, %s4994_s7, %s5002_s16, %s5487_s19, %s5487_s19, %s5486_s17  }
 0x12d   : > { %p5488_p8 = scmp.ne.s32.totalorder %s5468_s2, 0 }
 0x12e   : > { %s5034_s20 = sand.u32 (!%p5488_p8), 1, %s4550_s30  }
 0x12f   : > { %763 = sbr.rel (%p5488_p8) target bundleno = 6463 (0x193f), region = 112  ;;  %s3583_s21 = sshll.u32 (!%p5488_p8), %s5034_s20, 3 }
 0x130   : > { %s766_s3 = scalar_lea.sflag (!%p5488_p8), [#allocation3], %s5034_s20  ;;  %s5040_s5 = scalar_lea.vmem (!%p5488_p8), [#allocation2], %s3583_s21 }
 0x136   : > { %4517 = dma.done.wait (%p4935_p7), %s766_s3, 128  }
 0x137   : > { %4519 = vsyncadd (%p4935_p7), %s766_s3, 4294967168  ;;  %s774_s13 = sand.u32 1, %s4727_s26   ;;  %s3584_s2 = sshll.u32 %s5034_s20, 4 }
 0x138   : > { %s775_s16 = scalar_lea.sflag [#allocation6], %s774_s13  ;;  %s5048_s7 = scalar_lea.vmem [#allocation5], %s3584_s2 }
 0x139   : > { %4521 = dma.done.wait (%p4935_p7), %s775_s16, 256  }
 0x13a   : > { %4523 = vsyncadd (%p4935_p7), %s775_s16, 4294967040  ;;  %p5489_p11 = scmp.eq.s32.totalorder %s4727_s26, 0 }
 0x13c   : > { %4525 = dma.done.wait (%p5489_p11), [#allocation6], 512   ;;  %p5490_p3 = pmov %p5489_p11 }
 0x13e   : > { %4527 = vsyncadd (%p5490_p3), [#allocation6], 4294966784  ;;  %p5491_p12 = pmov %p5490_p3 }
 0x13f   : > { %p5492_p1 = pmov %p5490_p3 }
 0x140   : > { %4529 = dma.done.wait (%p5491_p12), [#allocation9], 528  }
 0x141   : > { %4531 = vsyncadd (%p5492_p1), [#allocation9], 4294966768  ;;  %p5493_p13 = pmov %p5492_p1 }
 0x142   : > { %p5494_p0 = pmov %p5492_p1 }
 0x143   : > { %4533 = dma.done.wait (%p5493_p13), [#allocation12], 1024  }
 0x144   : > { %4535 = vsyncadd (%p5494_p0), [#allocation12], 4294966272  ;;  %p5495_p7 = pmov %p5494_p0 }
 0x145   : > { %p5496_p2 = pmov %p5494_p0 }
 0x146   : > { %4537 = dma.done.wait (%p5495_p7), [#allocation15], 1024  }
 0x147   : > { %4539 = vsyncadd (%p5496_p2), [#allocation15], 4294966272  ;;  %v4571_v0 = vmov 0.0|0.0   ;;  %vm4572_vm0 = vmmov 0   ;;  %v4573_v1 = vmov 0.0   ;;  %v886_v2 = vld [vmem:[#allocation7] sm:$0xff] }
 0x148   : > { %3939 = vmatprep.subr.bf16.mxu0 %v4571_v0  ;;  %3748 = vmatprep.mubr.msk.f32.mxu0 %vm4572_vm0, %v4573_v1  ;;  %v887_v3 = vld [vmem:[#allocation7 + $0x8] sm:$0xff]  ;;  %v888_v4 = vld [vmem:[#allocation7 + $0x10] sm:$0xff]  ;;  %v889_v6 = vld [vmem:[#allocation7 + $0x18] sm:$0xff]  ;;  %vm897_vm1 = vcmask 261120   ;;  %s4574_s23 = smov 120   ;;  %s4575_s9 = smov 96  }
 0x149   : > { %3756 = vmatprep.subr.mxu1 %v4573_v1  ;;  %3758 = vmatprep.mubr.msk.f32.mxu1 %vm4572_vm0, %v4573_v1  ;;  %v3940_v5 = vpack.c.bf16 %v887_v3, %v886_v2  ;;  %v3943_v7 = vpack.c.bf16 %v889_v6, %v888_v4  ;;  %v5078_v8 = vld [vmem:[%s5040_s5] sm:$0xff]  ;;  %v3594_v9 = vld [vmem:[#allocation8] ss:$0 sm:$0xff]  ;;  %s4576_s0 = smov 88   ;;  %vm975_vm2 = vcmask 64512   ;;  %p878_p6 = scmp.lt.s32.totalorder %s4727_s26, 1 }
 0x14a   : > { %s5497_s17 = sld [smem:[#allocation27_spill]]  ;;  %s4577_s3 = smov 56   ;;  %v1308_v38 = vld [vmem:[#allocation10 + $0x8] sm:$0xff]  ;;  %v1140_v47 = vld [vmem:[#allocation10] sm:$0xff]  ;;  %vm5197_vm3 = vmpackc.low %vm975_vm2, %vm975_vm2  ;;  %vm2231_vm4 = vcmask 130048   ;;  %vm3276_vm5 = vcmask 523264  }
 0x14b   : > { %3941 = vmatpush3.bf16.msra.mxu0 %v3940_v5  ;;  %s879_s29 = scalar_select %p878_p6, %s4727_s26, 1 }
 0x14c   : > { %3942 = vmatprep.subr.bf16.mxu0 %v4571_v0  ;;  %s4578_s5 = smov 64   ;;  %s4579_s13 = smov 80  }
 0x14d   : > { %s3593_s27 = sshll.u32 %s879_s29, 3  ;;  %s4580_s2 = smov 112  }
 0x14e   : > { %s4581_s16 = smov 72   ;;  %s4582_s29 = smov 104  }
 0x14f   : > { %3944 = vmatpush3.bf16.msra.mxu0 %v3943_v7  ;;  %s4584_s15 = smov 40   ;;  %s5504_s22 = sld [smem:[#allocation37_spill]] }
 0x150   : > { %3751 = vmatprep.subr.mxu0 %v4573_v1  ;;  %s881_s19 = scalar_lea.vmem %s5497_s17, %s3593_s27  ;;  %s4583_s27 = smov 48  }
 0x151   : > { %v885_v16 = vld [vmem:[%s881_s19] sm:$0xff]  ;;  %s5508_s19 = sld [smem:[#allocation43_spill]]  ;;  %p5511_p5 = scmp.ne.s32.totalorder %s5480_s28, 0 }
 0x152   : > { %3749 = vmatmul.mubr.msk.f32.vlgmr.msra.gmra.mrb[0].mxu0 %vm897_vm1, %v5078_v8  ;;  %v5109_v17 = vmul.f32 1e+30, %v885_v16 }
 0x153   : > { %3753 = vmatprep.mubr.msk.f32.mxu0 %vm4572_vm0, %v4573_v1 }
 0x225   : > { %v967_v10 = vpop.f32.mrb[0].mxu0 }
 0x226   : > { %v5085_v11 = vadd.f32 %v3594_v9, %v967_v10  ;;  %v3750_v12 = vpop.f32.mrb[1].mxu0 }
 0x228   : > { %1141 = vrot.lane.b32.xlu1 %v5085_v11, %s4574_s23  ;;  %973 = vrot.lane.b32.xlu0 %v5085_v11, %s4575_s9 }
 0x22c   : > { %1143 = vrot.lane.b32.xlu0 %v5085_v11, %s4576_s0 }
 0x29a   : > { %v974_v13 = vpop.permute.xlu0 %973  ;;  %v1142_v15 = vpop.permute.xlu1 %1141 }
 0x29b   : > { %3752 = vmatpush3.xpose.msk.msra.mxu0 %vm975_vm2, %v974_v13 }
 0x29c   : > { %3761 = vmatprep.subr.mxu0 %v4573_v1 }
 0x29e   : > { %3754 = vmatmul.mubr.msk.f32.vlgmr.msra.gmra.mrb[2].mxu0 %vm975_vm2, %v5085_v11  ;;  %v1144_v14 = vpop.permute.xlu0 %1143 }
 0x29f   : > { %3762 = vmatpush3.xpose.msk.msra.mxu0 %vm975_vm2, %v1144_v14  ;;  %3763 = vmatprep.mubr.msk.f32.mxu0 %vm4572_vm0, %v4573_v1 }
 0x2a0   : > { %3771 = vmatprep.subr.mxu0 %v4573_v1 }
 0x2a2   : > { %3764 = vmatmul.mubr.msk.f32.vlgmr.msra.gmra.mrb[4].mxu0 %vm975_vm2, %v1142_v15  ;;  %v1622_v15 = vld [vmem:[#allocation10 + $0x10] sm:$0xff] }
 0x2a3   : > { %3773 = vmatprep.mubr.msk.f32.mxu0 %vm4572_vm0, %v4573_v1  ;;  %3772 = vmatpush3.msra.mxu0 %v1308_v38  ;;  %v1977_v38 = vld [vmem:[#allocation11] sm:$0xff] }
 0x2a4   : > { %3781 = vmatprep.subr.mxu0 %v4573_v1 }
 0x371   : > { %v1046_v18 = vpop.f32.mrb[2].mxu0 }
 0x372   : > { %v1050_v19 = vmul.f32 0.17677669, %v1046_v18  ;;  %v3755_v20 = vpop.f32.mrb[3].mxu0 }
 0x374   : > { %v1052_v21 = vsub.f32 %v1050_v19, %v5109_v17 }
 0x375   : > { %v1215_v22 = vpop.f32.mrb[4].mxu0 }
 0x376   : > { %v1219_v23 = vmul.f32 0.17677669, %v1215_v22  ;;  %v3765_v24 = vpop.f32.mrb[5].mxu0  ;;  %v1053_v25 = vsel %vm975_vm2, %v1052_v21, -inf }
 0x377   : > { %1054 = vmax.xlane.f32.xlu1 %v1053_v25 }
 0x378   : > { %v1220_v26 = vsub.f32 %v1219_v23, %v5109_v17 }
 0x37a   : > { %v1221_v27 = vsel %vm975_vm2, %v1220_v26, -inf }
 0x37b   : > { %1222 = vmax.xlane.f32.xlu0 %v1221_v27 }
 0x404   : > { %v1055_v28 = vpop.xlane.xlu1 %1054 }
 0x405   : > { %v1056_v29 = vsub.f32 %v1052_v21, %v1055_v28 }
 0x407   : > { %v1057_v30 = vmul.f32 1.442695, %v1056_v29 }
 0x408   : > { %v1223_v31 = vpop.xlane.xlu0 %1222 }
 0x409   : > { %4178 = vpow2.f32 %v1057_v30  ;;  %v1224_v32 = vsub.f32 %v1220_v26, %v1223_v31  ;;  %v1864_v30 = vld [vmem:[#allocation10 + $0x18] sm:$0xff] }
 0x40b   : > { %v1225_v33 = vmul.f32 1.442695, %v1224_v32 }
 0x40d   : > { %4180 = vpow2.f32 %v1225_v33 }
 0x413   : > { %v4179_v34 = vpop.eup %4178 }
 0x414   : > { %v1059_v35 = vsel %vm975_vm2, %v4179_v34, 0.0 }
 0x415   : > { %1060 = vadd.xlane.f32.xlu0 %v1059_v35  ;;  %v2058_v35 = vld [vmem:[#allocation13] sm:$0xff] }
 0x417   : > { %v4181_v36 = vpop.eup %4180 }
 0x418   : > { %v1227_v37 = vsel %vm975_vm2, %v4181_v36, 0.0 }
 0x419   : > { %1228 = vadd.xlane.f32.xlu1 %v1227_v37 }
 0x42a   : > { %1232 = vrot.lane.b32.xlu1 %v5085_v11, %s4577_s3  ;;  %s3650_s3 = sshll.u32 %s4727_s26, 7  ;;  %s4585_s26 = smov [#allocation17]  }
 0x42b   : > { %1064 = vrot.lane.b32.xlu0 %v5085_v11, %s4578_s5  ;;  %s877_s5 = scalar_lea.vmem [#allocation17], %s3583_s21  ;;  %s4476_s21 = sshll.u32 %s4585_s26, 4  ;;  %s4477_s21 = int_to_ptr.vmem [resolvable:$false] %s4476_s21 }
 0x42c   : > { %s4478_s17 = scalar_lea.vmem %s4477_s21, 256 }
 0x42e   : > { %1457 = vrot.lane.b32.xlu1 %v5085_v11, %s4579_s13 }
 0x42f   : > { %1455 = vrot.lane.b32.xlu0 %v5085_v11, %s4580_s2 }
 0x4a2   : > { %v1061_v39 = vpop.xlane.xlu0 %1060 }
 0x4a3   : > { %4182 = vrcp.f32 %v1061_v39  ;;  %v1978_v39 = vld [vmem:[#allocation11 + $0x8] sm:$0xff] }
 0x4a6   : > { %v1229_v40 = vpop.xlane.xlu1 %1228  ;;  %v1065_v41 = vpop.permute.xlu0 %1064 }
 0x4a7   : > { %4184 = vrcp.f32 %v1229_v40  ;;  %3757 = vmatpush3.msra.mxu1 %v1065_v41  ;;  %v3946_v40 = vpack.c.bf16 %v1978_v39, %v1977_v38  ;;  %v1979_v41 = vld [vmem:[#allocation11 + $0x10] sm:$0xff] }
 0x4a8   : > { %3766 = vmatprep.subr.mxu1 %v4573_v1 }
 0x4aa   : > { %v1233_v44 = vpop.permute.xlu1 %1232  ;;  %v1456_v53 = vpop.permute.xlu0 %1455 }
 0x4ad   : > { %v4183_v42 = vpop.eup %4182 }
 0x4ae   : > { %v1063_v43 = vmul.f32 %v4183_v42, %v4179_v34  ;;  %v1458_v51 = vpop.permute.xlu1 %1457  ;;  %v1980_v42 = vld [vmem:[#allocation11 + $0x18] sm:$0xff] }
 0x4b0   : > { %3759 = vmatmul.mubr.msk.f32.vlgmr.msra.gmra.mrb[0].mxu1 %vm975_vm2, %v1063_v43  ;;  %v3949_v43 = vpack.c.bf16 %v1980_v42, %v1979_v41 }
 0x4b1   : > { %v4185_v45 = vpop.eup %4184  ;;  %3767 = vmatpush3.msra.mxu1 %v1233_v44  ;;  %3768 = vmatprep.mubr.msk.f32.mxu1 %vm4572_vm0, %v4573_v1  ;;  %v2060_v44 = vld [vmem:[#allocation13 + $0x10] sm:$0xff] }
 0x4b2   : > { %v1231_v46 = vmul.f32 %v4185_v45, %v4181_v36  ;;  %3776 = vmatprep.subr.mxu1 %v4573_v1  ;;  %v2059_v36 = vld [vmem:[#allocation13 + $0x8] sm:$0xff]  ;;  %v2061_v45 = vld [vmem:[#allocation13 + $0x18] sm:$0xff] }
 0x4b3   : > { %v3951_v37 = vpack.c.bf16 %v2059_v36, %v2058_v35 }
 0x4b4   : > { %3769 = vmatmul.mubr.msk.f32.vlgmr.msra.gmra.mrb[2].mxu1 %vm975_vm2, %v1231_v46  ;;  %v3955_v46 = vpack.c.bf16 %v2061_v45, %v2060_v44 }
 0x4b5   : > { %3778 = vmatprep.mubr.msk.f32.mxu1 %vm4572_vm0, %v4573_v1  ;;  %3777 = vmatpush3.msra.mxu1 %v1140_v47  ;;  %v883_v47 = vld [vmem:[%s5048_s7] sm:$0xff] }
 0x4b6   : > { %3786 = vmatprep.subr.mxu1 %v4573_v1 }
 0x583   : > { %v1136_v48 = vpop.f32.mrb[0].mxu1 }
 0x584   : > { %v3760_v49 = vpop.f32.mrb[1].mxu1  ;;  %3779 = vmatmul.mubr.msk.f32.vlgmr.msra.gmra.mrb[4].mxu1 %vm975_vm2, %v1136_v48 }
 0x585   : > { %3788 = vmatprep.mubr.msk.f32.mxu1 %vm4572_vm0, %v4573_v1 }
 0x587   : > { %v1304_v50 = vpop.f32.mrb[2].mxu1 }
 0x588   : > { %v3770_v52 = vpop.f32.mrb[3].mxu1  ;;  %3774 = vmatmul.mubr.msk.f32.vlgmr.msra.gmra.mrb[6].mxu0 %vm975_vm2, %v1304_v50  ;;  %v884_v50 = vld [vmem:[%s5048_s7 + $0x8] sm:$0xff]  ;;  %s5503_s7 = sld [smem:[#allocation41_spill]] }
 0x589   : > { %3782 = vmatpush3.xpose.msk.msra.mxu0 %vm975_vm2, %v1458_v51  ;;  %3783 = vmatprep.mubr.msk.f32.mxu0 %vm4572_vm0, %v4573_v1 }
 0x58a   : > { %3791 = vmatprep.subr.mxu0 %v4573_v1 }
 0x58c   : > { %3784 = vmatmul.mubr.msk.f32.vlgmr.msra.gmra.mrb[8].mxu0 %vm975_vm2, %v1456_v53 }
 0x58d   : > { %3793 = vmatprep.mubr.msk.f32.mxu0 %vm4572_vm0, %v4573_v1  ;;  %3792 = vmatpush3.msra.mxu0 %v1622_v15 }
 0x58e   : > { %3801 = vmatprep.subr.mxu0 %v4573_v1 }
 0x657   : > { %v1451_v54 = vpop.f32.mrb[4].mxu1 }
 0x658   : > { %v3780_v55 = vpop.f32.mrb[5].mxu1 }
 0x65b   : > { %v1378_v56 = vpop.f32.mrb[6].mxu0 }
 0x65c   : > { %v5144_v57 = vadd.f32 %v1451_v54, %v1378_v56  ;;  %v3775_v58 = vpop.f32.mrb[7].mxu0  ;;  %v3617_v56 = vld [vmem:[%s5420_s12] ss:$0 sm:$0xff] }
 0x65f   : > { %v1529_v59 = vpop.f32.mrb[8].mxu0 }
 0x660   : > { %v1533_v60 = vmul.f32 0.17677669, %v1529_v59  ;;  %v3785_v61 = vpop.f32.mrb[9].mxu0 }
 0x662   : > { %v1534_v62 = vsub.f32 %v1533_v60, %v5109_v17 }
 0x664   : > { %v1535_v63 = vsel %vm975_vm2, %v1534_v62, -inf }
 0x665   : > { %1536 = vmax.xlane.f32.xlu1 %v1535_v63 }
 0x676   : > { %1699 = vrot.lane.b32.xlu1 %v5085_v11, %s4581_s16 }
 0x67a   : > { %1697 = vrot.lane.b32.xlu1 %v5085_v11, %s4582_s29 }
 0x6f2   : > { %v1537_v2 = vpop.xlane.xlu1 %1536 }
 0x6f3   : > { %v1538_v3 = vsub.f32 %v1534_v62, %v1537_v2  ;;  %v3615_v62 = vld [vmem:[%s5418_s10] ss:$0 sm:$0xff] }
 0x6f5   : > { %v1539_v4 = vmul.f32 1.442695, %v1538_v3 }
 0x6f6   : > { %v1700_v12 = vpop.permute.xlu1 %1699 }
 0x6f7   : > { %4186 = vpow2.f32 %v1539_v4 }
 0x6fa   : > { %v1698_v14 = vpop.permute.xlu1 %1697 }
 0x701   : > { %v4187_v5 = vpop.eup %4186 }
 0x702   : > { %v1541_v6 = vsel %vm975_vm2, %v4187_v5, 0.0 }
 0x703   : > { %1542 = vadd.xlane.f32.xlu0 %v1541_v6 }
 0x719   : > { %1546 = vrot.lane.b32.xlu0 %v5085_v11, %s4583_s27 }
 0x790   : > { %v1543_v7 = vpop.xlane.xlu0 %1542 }
 0x791   : > { %4188 = vrcp.f32 %v1543_v7 }
 0x794   : > { %v1547_v9 = vpop.permute.xlu0 %1546 }
 0x795   : > { %3787 = vmatpush3.msra.mxu1 %v1547_v9 }
 0x796   : > { %3796 = vmatprep.subr.mxu1 %v4573_v1 }
 0x79b   : > { %v4189_v10 = vpop.eup %4188 }
 0x79c   : > { %v1545_v13 = vmul.f32 %v4189_v10, %v4187_v5 }
 0x79e   : > { %3789 = vmatmul.mubr.msk.f32.vlgmr.msra.gmra.mrb[6].mxu1 %vm975_vm2, %v1545_v13 }
 0x79f   : > { %3797 = vmatpush3.xpose.msk.msra.mxu1 %vm975_vm2, %v1700_v12  ;;  %3798 = vmatprep.mubr.msk.f32.mxu1 %vm4572_vm0, %v4573_v1 }
 0x7a0   : > { %3806 = vmatprep.subr.mxu1 %v4573_v1 }
 0x7a2   : > { %3799 = vmatmul.mubr.msk.f32.vlgmr.msra.gmra.mrb[8].mxu1 %vm975_vm2, %v1698_v14 }
 0x7a3   : > { %3808 = vmatprep.mubr.msk.f32.mxu1 %vm4572_vm0, %v4573_v1  ;;  %3807 = vmatpush3.msra.mxu1 %v1864_v30 }
 0x7a4   : > { %3952 = vmatprep.subr.bf16.mxu1 %v3951_v37 }
 0x871   : > { %v1618_v16 = vpop.f32.mrb[6].mxu1 }
 0x872   : > { %v3790_v18 = vpop.f32.mrb[7].mxu1  ;;  %3794 = vmatmul.mubr.msk.f32.vlgmr.msra.gmra.mrb[10].mxu0 %vm975_vm2, %v1618_v16 }
 0x873   : > { %3803 = vmatprep.mubr.msk.f32.mxu0 %vm4572_vm0, %v4573_v1 }
 0x875   : > { %v1771_v19 = vpop.f32.mrb[8].mxu1 }
 0x876   : > { %v1775_v20 = vmul.f32 0.17677669, %v1771_v19  ;;  %v3800_v21 = vpop.f32.mrb[9].mxu1 }
 0x878   : > { %v1776_v22 = vsub.f32 %v1775_v20, %v5109_v17 }
 0x87a   : > { %v1777_v23 = vsel %vm975_vm2, %v1776_v22, -inf }
 0x87b   : > { %1778 = vmax.xlane.f32.xlu0 %v1777_v23 }
 0x891   : > { %1788 = vrot.lane.b32.xlu0 %v5085_v11, %s4584_s15  ;;  %s5502_s15 = sld [smem:[#allocation33_spill]] }
 0x908   : > { %v1779_v24 = vpop.xlane.xlu0 %1778 }
 0x909   : > { %v1780_v25 = vsub.f32 %v1776_v22, %v1779_v24 }
 0x90b   : > { %v1781_v26 = vmul.f32 1.442695, %v1780_v25 }
 0x90c   : > { %v1789_v27 = vpop.permute.xlu0 %1788 }
 0x90d   : > { %4190 = vpow2.f32 %v1781_v26  ;;  %3802 = vmatpush3.msra.mxu0 %v1789_v27 }
 0x90e   : > { %3945 = vmatprep.subr.bf16.mxu0 %v4571_v0 }
 0x917   : > { %v4191_v28 = vpop.eup %4190 }
 0x918   : > { %v1783_v29 = vsel %vm975_vm2, %v4191_v28, 0.0 }
 0x919   : > { %1784 = vadd.xlane.f32.xlu1 %v1783_v29 }
 0x945   : > { %v1692_v17 = vpop.f32.mrb[10].mxu0 }
 0x946   : > { %v1696_v31 = vadd.f32 %v1692_v17, %v5144_v57  ;;  %v3795_v32 = vpop.f32.mrb[11].mxu0 }
 0x9a6   : > { %v1785_v33 = vpop.xlane.xlu1 %1784 }
 0x9a7   : > { %4192 = vrcp.f32 %v1785_v33 }
 0x9b1   : > { %v4193_v11 = vpop.eup %4192 }
 0x9b2   : > { %v1787_v34 = vmul.f32 %v4193_v11, %v4191_v28  ;;  %v2322_v28 = vld [vmem:[#allocation14] sm:$0xff] }
 0x9b4   : > { %3804 = vmatmul.mubr.msk.f32.vlgmr.msra.gmra.mrb[12].mxu0 %vm975_vm2, %v1787_v34 }
 0x9b5   : > { %3819 = vmatprep.mubr.msk.f32.mxu0 %vm4572_vm0, %v4573_v1  ;;  %3947 = vmatpush3.bf16.msra.mxu0 %v3946_v40 }
 0x9b6   : > { %3948 = vmatprep.subr.bf16.mxu0 %v4571_v0 }
 0x9b9   : > { %3950 = vmatpush3.bf16.msra.mxu0 %v3949_v43 }
 0x9ba   : > { %3959 = vmatprep.subr.bf16.mxu0 %v4571_v0 }
 0x9bc   : > { %3820 = vmatmul.mubr.msk.f32.vlgmr.msra.gmra.mrb[14].mxu0 %vm897_vm1, %v5078_v8 }
 0x9bd   : > { %3837 = vmatprep.mubr.msk.f32.mxu0 %vm4572_vm0, %v4573_v1 }
 0xa87   : > { %v1860_v48 = vpop.f32.mrb[12].mxu0 }
 0xa88   : > { %v3805_v49 = vpop.f32.mrb[13].mxu0  ;;  %3809 = vmatmul.mubr.msk.f32.vlgmr.msra.gmra.mrb[10].mxu1 %vm975_vm2, %v1860_v48 }
 0xa89   : > { %3954 = vmatpush3.bf16.msra.mxu1 %v3951_v37  ;;  %3830 = vmatprep.mubr.msk.f32.mxu1 %vm897_vm1, %v883_v47  ;;  %v2496_v47 = vld [vmem:[#allocation14 + $0x8] sm:$0xff] }
 0xa8a   : > { %3956 = vmatprep.subr.bf16.mxu1 %v3955_v46 }
 0xa8d   : > { %3958 = vmatpush3.bf16.msra.mxu1 %v3955_v46 }
 0xa8e   : > { %3963 = vmatprep.subr.bf16.mxu1 %v4571_v0 }
 0xa8f   : > { %v2054_v51 = vpop.f32.mrb[14].mxu0 }
 0xa90   : > { %3831 = vmatmul.mubr.msk.f32.vlgmr.msra.gmra.mrb[12].mxu1 %vm897_vm1, %v884_v50  ;;  %v3821_v52 = vpop.f32.mrb[15].mxu0  ;;  %v2055_v3 = vadd.f32 %v3615_v62, %v2054_v51 }
 0xa91   : > { %3844 = vmatprep.mubr.msk.f32.mxu1 %vm4572_vm0, %v4573_v1 }
 0xb5b   : > { %v1934_v53 = vpop.f32.mrb[10].mxu1 }
 0xb5c   : > { %v5190_v54 = vadd.f32 %v1934_v53, %v1696_v31  ;;  %v3810_v55 = vpop.f32.mrb[11].mxu1 }
 0xb63   : > { %v3832_v57 = vpop.f32.mrb[12].mxu1 }
 0xb64   : > { %v2147_v58 = vadd.f32 %v3832_v57, %v3617_v56  ;;  %v2141_v59 = vpop.f32.mrb[13].mxu1 }
 0xb65   : > { %v2142_v60 = vadd.f32 %v3617_v56, %v2141_v59 }
 0xb67   : > { %v5204_v63 = vpack.i.bf16 %v2147_v58, %v2142_v60  ;;  %v3960_v2 = vpack.c.bf16 %v2147_v58, %v2142_v60 }
 0xb69   : > { %4149 = vrot.lane.b32.xlu0 %v5204_v63, %s4574_s23  ;;  %3962 = vmatpush3.bf16.xpose.msk.msra.mxu0 %vm5197_vm3, %v3960_v2 }
 0xb6a   : > { %3970 = vmatprep.subr.bf16.mxu0 %v4571_v0 }
 0xb6d   : > { %2323 = vrot.lane.b32.xlu0 %v2055_v3, %s4574_s23  ;;  %s5505_s23 = sld [smem:[#allocation38_spill]] }
 0xb70   : > { %3838 = vmatmul.mubr.msk.f32.vlgmr.msra.gmra.mrb[16].mxu0 %vm975_vm2, %v2055_v3 }
 0xb71   : > { %3858 = vmatprep.mubr.msk.f32.mxu0 %vm4572_vm0, %v4573_v1 }
 0xbdb   : > { %v4150_v21 = vpop.permute.xlu0 %4149 }
 0xbdc   : > { %v4152_v23 = vunpack.i.h.bf16 %v4150_v21  ;;  %v4151_v24 = vunpack.i.l.bf16 %v4150_v21 }
 0xbde   : > { %v3967_v26 = vpack.c.bf16 %v4152_v23, %v4151_v24 }
 0xbdf   : > { %v2324_v27 = vpop.permute.xlu0 %2323 }
 0xc43   : > { %v2226_v4 = vpop.f32.mrb[16].mxu0 }
 0xc44   : > { %v2230_v5 = vmul.f32 0.17677669, %v2226_v4  ;;  %v3839_v6 = vpop.f32.mrb[17].mxu0 }
 0xc46   : > { %v2232_v7 = vsel %vm2231_vm4, %v2230_v5, -inf }
 0xc47   : > { %2233 = vmax.xlane.f32.xlu1 %v2232_v7 }
 0xcd4   : > { %v2234_v9 = vpop.xlane.xlu1 %2233 }
 0xcd5   : > { %v2235_v10 = vsub.f32 %v2230_v5, %v2234_v9 }
 0xcd7   : > { %v2236_v12 = vmul.f32 1.442695, %v2235_v10 }
 0xcd9   : > { %4194 = vpow2.f32 %v2236_v12 }
 0xce3   : > { %v4195_v13 = vpop.eup %4194 }
 0xce4   : > { %v2238_v14 = vsel %vm2231_vm4, %v4195_v13, 0.0 }
 0xce5   : > { %2239 = vadd.xlane.f32.xlu1 %v2238_v14 }
 0xcf6   : > { %4144 = vrot.lane.b32.xlu1 %v5204_v63, %s4575_s9 }
 0xd72   : > { %v2240_v15 = vpop.xlane.xlu1 %2239 }
 0xd73   : > { %4196 = vrcp.f32 %v2240_v15 }
 0xd76   : > { %v4145_v16 = vpop.permute.xlu1 %4144 }
 0xd77   : > { %v4147_v18 = vunpack.i.h.bf16 %v4145_v16  ;;  %v4146_v19 = vunpack.i.l.bf16 %v4145_v16 }
 0xd79   : > { %v3964_v20 = vpack.c.bf16 %v4147_v18, %v4146_v19 }
 0xd7b   : > { %3965 = vmatpush3.bf16.msra.mxu1 %v3964_v20 }
 0xd7c   : > { %3966 = vmatprep.subr.bf16.mxu1 %v4571_v0 }
 0xd7d   : > { %v4197_v22 = vpop.eup %4196 }
 0xd7e   : > { %v2242_v25 = vmul.f32 %v4197_v22, %v4195_v13 }
 0xd80   : > { %3845 = vmatmul.mubr.msk.f32.vlgmr.msra.gmra.mrb[14].mxu1 %vm2231_vm4, %v2242_v25 }
 0xd81   : > { %3851 = vmatprep.mubr.msk.f32.mxu1 %vm4572_vm0, %v4573_v1 }
 0xd84   : > { %3969 = vmatpush3.bf16.xpose.msk.msra.mxu1 %vm5197_vm3, %v3967_v26 }
 0xd85   : > { %3866 = vmatprep.subr.mxu1 %v4573_v1 }
 0xd8b   : > { %3852 = vmatmul.mubr.msk.f32.vlgmr.msra.gmra.mrb[16].mxu1 %vm975_vm2, %v2324_v27 }
 0xd8c   : > { %3868 = vmatprep.mubr.msk.f32.mxu1 %vm4572_vm0, %v4573_v1  ;;  %3867 = vmatpush3.msra.mxu1 %v2322_v28 }
 0xd8d   : > { %3977 = vmatprep.subr.bf16.mxu1 %v4571_v0 }
 0xe53   : > { %v2318_v29 = vpop.f32.mrb[14].mxu1 }
 0xe54   : > { %v3846_v30 = vpop.f32.mrb[15].mxu1  ;;  %3869 = vmatmul.mubr.msk.f32.vlgmr.msra.gmra.mrb[18].mxu1 %vm975_vm2, %v2318_v29 }
 0xe55   : > { %3882 = vmatprep.mubr.msk.f32.mxu1 %vm4572_vm0, %v4573_v1 }
 0xe5e   : > { %v2401_v17 = vpop.f32.mrb[16].mxu1 }
 0xe5f   : > { %v2405_v31 = vmul.f32 0.17677669, %v2401_v17  ;;  %v3853_v32 = vpop.f32.mrb[17].mxu1 }
 0xe61   : > { %v2406_v33 = vsel %vm2231_vm4, %v2405_v31, -inf }
 0xe62   : > { %2407 = vmax.xlane.f32.xlu0 %v2406_v33 }
 0xe78   : > { %4154 = vrot.lane.b32.xlu0 %v5204_v63, %s4576_s0  ;;  %s5500_s0 = sld [smem:[#allocation31_spill]] }
 0xe7c   : > { %2643 = vrot.lane.b32.xlu0 %v2055_v3, %s4580_s2 }
 0xe7e   : > { %v3612_v24 = vld [vmem:[%s5500_s0] ss:$0 sm:$0xff]  ;;  %s5509_s0 = sld [smem:[#allocation44_spill]] }
 0xe7f   : > { %v1945_v25 = vadd.f32 %v3612_v24, %v5190_v54  ;;  %v3264_v24 = vld [vmem:[%s5503_s7 + $0x18] sm:$0xff] }
 0xe80   : > { %2891 = vrot.lane.b32.xlu0 %v2055_v3, %s4582_s29 }
 0xe81   : > { %v1946_v26 = vadd.f32 %v1945_v25, %v5078_v8 }
 0xe83   : > { %v1949_v27 = vsel %vm897_vm1, %v1946_v26, 0.0 }
 0xeef   : > { %v2408_v11 = vpop.xlane.xlu0 %2407 }
 0xef0   : > { %v2409_v34 = vsub.f32 %v2405_v31, %v2408_v11 }
 0xef2   : > { %v2410_v35 = vmul.f32 1.442695, %v2409_v34 }
 0xef3   : > { %v4155_v36 = vpop.permute.xlu0 %4154 }
 0xef4   : > { %4198 = vpow2.f32 %v2410_v35  ;;  %v4157_v37 = vunpack.i.h.bf16 %v4155_v36  ;;  %v4156_v38 = vunpack.i.l.bf16 %v4155_v36  ;;  %v2816_v35 = vld [vmem:[#allocation14 + $0x10] sm:$0xff] }
 0xef6   : > { %v3971_v39 = vpack.c.bf16 %v4157_v37, %v4156_v38 }
 0xef7   : > { %v2644_v58 = vpop.permute.xlu0 %2643 }
 0xef8   : > { %3972 = vmatpush3.bf16.msra.mxu0 %v3971_v39 }
 0xef9   : > { %3861 = vmatprep.subr.mxu0 %v4573_v1 }
 0xefb   : > { %v2892_v60 = vpop.permute.xlu0 %2891 }
 0xefe   : > { %v4199_v40 = vpop.eup %4198 }
 0xeff   : > { %v2412_v41 = vsel %vm2231_vm4, %v4199_v40, 0.0 }
 0xf00   : > { %2413 = vadd.xlane.f32.xlu1 %v2412_v41 }
 0xf11   : > { %4159 = vrot.lane.b32.xlu1 %v5204_v63, %s4580_s2 }
 0xf15   : > { %4164 = vrot.lane.b32.xlu1 %v5204_v63, %s4582_s29  ;;  %s5510_s29 = sld [smem:[#allocation45_spill]] }
 0xf1b   : > { %s5363_s27 = scalar_lea.hbm %s5510_s29, %s3650_s3 }
 0xf27   : > { %v2639_v42 = vpop.f32.mrb[18].mxu1 }
 0xf28   : > { %v3870_v43 = vpop.f32.mrb[19].mxu1 }
 0xf8d   : > { %v2414_v44 = vpop.xlane.xlu1 %2413 }
 0xf8e   : > { %4200 = vrcp.f32 %v2414_v44 }
 0xf91   : > { %v4160_v48 = vpop.permute.xlu1 %4159 }
 0xf92   : > { %v4162_v49 = vunpack.i.h.bf16 %v4160_v48  ;;  %v4161_v50 = vunpack.i.l.bf16 %v4160_v48 }
 0xf94   : > { %v3974_v51 = vpack.c.bf16 %v4162_v49, %v4161_v50 }
 0xf95   : > { %v4165_v53 = vpop.permute.xlu1 %4164 }
 0xf96   : > { %v4167_v56 = vunpack.i.h.bf16 %v4165_v53  ;;  %v4166_v57 = vunpack.i.l.bf16 %v4165_v53 }
 0xf98   : > { %v4201_v45 = vpop.eup %4200  ;;  %v3981_v59 = vpack.c.bf16 %v4167_v56, %v4166_v57 }
 0xf99   : > { %v2416_v46 = vmul.f32 %v4201_v45, %v4199_v40  ;;  %v3064_v45 = vld [vmem:[#allocation14 + $0x18] sm:$0xff] }
 0xf9b   : > { %3859 = vmatmul.mubr.msk.f32.vlgmr.msra.gmra.mrb[18].mxu0 %vm2231_vm4, %v2416_v46 }
 0xf9c   : > { %3862 = vmatpush3.msra.mxu0 %v2496_v47  ;;  %3863 = vmatprep.mubr.msk.f32.mxu0 %vm4572_vm0, %v4573_v1 }
 0xf9d   : > { %3973 = vmatprep.subr.bf16.mxu0 %v4571_v0 }
0x106e   : > { %v2492_v52 = vpop.f32.mrb[18].mxu0 }
0x106f   : > { %v3860_v55 = vpop.f32.mrb[19].mxu0  ;;  %3864 = vmatmul.mubr.msk.f32.vlgmr.msra.gmra.mrb[20].mxu0 %vm975_vm2, %v2492_v52 }
0x1070   : > { %3976 = vmatpush3.bf16.xpose.msk.msra.mxu0 %vm5197_vm3, %v3974_v51  ;;  %3875 = vmatprep.mubr.msk.f32.mxu0 %vm4572_vm0, %v4573_v1 }
0x1071   : > { %3980 = vmatprep.subr.bf16.mxu0 %v4571_v0 }
0x1077   : > { %3876 = vmatmul.mubr.msk.f32.vlgmr.msra.gmra.mrb[22].mxu0 %vm975_vm2, %v2644_v58 }
0x1078   : > { %3983 = vmatpush3.bf16.xpose.msk.msra.mxu0 %vm5197_vm3, %v3981_v59  ;;  %3894 = vmatprep.mubr.msk.f32.mxu0 %vm4572_vm0, %v4573_v1  ;;  %v3640_v59 = vld [vmem:[%s5422_s14] ss:$0 sm:$0xff] }
0x1079   : > { %3987 = vmatprep.subr.bf16.mxu0 %v4571_v0 }
0x107f   : > { %3895 = vmatmul.mubr.msk.f32.vlgmr.msra.gmra.mrb[24].mxu0 %vm975_vm2, %v2892_v60 }
0x1080   : > { %3917 = vmatprep.mubr.msk.f32.mxu0 %vm4572_vm0, %v4573_v1 }
0x1142   : > { %v2566_v62 = vpop.f32.mrb[20].mxu0 }
0x1143   : > { %v5263_v2 = vadd.f32 %v2639_v42, %v2566_v62  ;;  %v3865_v3 = vpop.f32.mrb[21].mxu0 }
0x114a   : > { %v2721_v4 = vpop.f32.mrb[22].mxu0 }
0x114b   : > { %v2725_v5 = vmul.f32 0.17677669, %v2721_v4  ;;  %v3877_v6 = vpop.f32.mrb[23].mxu0 }
0x114d   : > { %v2726_v61 = vsel %vm2231_vm4, %v2725_v5, -inf }
0x114e   : > { %2727 = vmax.xlane.f32.xlu1 %v2726_v61 }
0x1152   : > { %v2969_v7 = vpop.f32.mrb[24].mxu0 }
0x1153   : > { %v2973_v9 = vmul.f32 0.17677669, %v2969_v7  ;;  %v3896_v10 = vpop.f32.mrb[25].mxu0 }
0x1155   : > { %v2974_v12 = vsel %vm2231_vm4, %v2973_v9, -inf }
0x1156   : > { %2975 = vmax.xlane.f32.xlu1 %v2974_v12 }
0x11db   : > { %v2728_v13 = vpop.xlane.xlu1 %2727 }
0x11dc   : > { %v2729_v14 = vsub.f32 %v2725_v5, %v2728_v13  ;;  %v3176_v13 = vld [vmem:[#allocation16] sm:$0xff] }
0x11de   : > { %v2730_v15 = vmul.f32 1.442695, %v2729_v14  ;;  %v3177_v14 = vld [vmem:[#allocation16 + $0x8] sm:$0xff] }
0x11e0   : > { %4202 = vpow2.f32 %v2730_v15  ;;  %v3988_v15 = vpack.c.bf16 %v3177_v14, %v3176_v13 }
0x11e2   : > { %3989 = vmatpush3.bf16.msra.mxu0 %v3988_v15 }
0x11e3   : > { %v2976_v16 = vpop.xlane.xlu1 %2975  ;;  %3990 = vmatprep.subr.bf16.mxu0 %v4571_v0 }
0x11e4   : > { %v2977_v18 = vsub.f32 %v2973_v9, %v2976_v16  ;;  %v3178_v16 = vld [vmem:[#allocation16 + $0x10] sm:$0xff] }
0x11e6   : > { %v2978_v19 = vmul.f32 1.442695, %v2977_v18  ;;  %v3179_v18 = vld [vmem:[#allocation16 + $0x18] sm:$0xff] }
0x11e8   : > { %4204 = vpow2.f32 %v2978_v19  ;;  %v3991_v19 = vpack.c.bf16 %v3179_v18, %v3178_v16 }
0x11ea   : > { %v4203_v20 = vpop.eup %4202  ;;  %3992 = vmatpush3.bf16.msra.mxu0 %v3991_v19 }
0x11eb   : > { %v2732_v21 = vsel %vm2231_vm4, %v4203_v20, 0.0 }
0x11ec   : > { %2733 = vadd.xlane.f32.xlu0 %v2732_v21  ;;  %v3262_v21 = vld [vmem:[%s5503_s7 + $0x8] sm:$0xff] }
0x11f2   : > { %v4205_v22 = vpop.eup %4204 }
0x11f3   : > { %v2980_v23 = vsel %vm2231_vm4, %v4205_v22, 0.0 }
0x11f4   : > { %2981 = vadd.xlane.f32.xlu1 %v2980_v23 }
0x1202   : > { %4169 = vrot.lane.b32.xlu0 %v5204_v63, %s4579_s13  ;;  %s5501_s13 = sld [smem:[#allocation32_spill]] }
0x1205   : > { %4174 = vrot.lane.b32.xlu1 %v5204_v63, %s4581_s16  ;;  %s5506_s16 = sld [smem:[#allocation40_spill]] }
0x1208   : > { %v3613_v57 = vld [vmem:[%s5501_s13] ss:$0 sm:$0xff]  ;;  %s3396_s13 = sshll.u32 %s877_s5, 4  ;;  %s5365_s13 = int_to_ptr.vmem [resolvable:$true] %s3396_s13 }
0x1209   : > { %p4479_p8 = scmp.lt.s32.totalorder %s5365_s13, %s4477_s21 }
0x1221   : > { %1950 = vadd.xlane.f32.xlu0 %v1949_v27  ;;  %v3266_v27 = vld [vmem:[%s5503_s7 + $0x28] sm:$0xff] }
0x1279   : > { %v2734_v28 = vpop.xlane.xlu0 %2733 }
0x127a   : > { %4206 = vrcp.f32 %v2734_v28 }
0x127d   : > { %v4170_v29 = vpop.permute.xlu0 %4169 }
0x127e   : > { %v4172_v30 = vunpack.i.h.bf16 %v4170_v29  ;;  %v4171_v17 = vunpack.i.l.bf16 %v4170_v29 }
0x1280   : > { %v3978_v31 = vpack.c.bf16 %v4172_v30, %v4171_v17 }
0x1281   : > { %v2982_v36 = vpop.xlane.xlu1 %2981 }
0x1282   : > { %3979 = vmatpush3.bf16.msra.mxu1 %v3978_v31  ;;  %4208 = vrcp.f32 %v2982_v36 }
0x1283   : > { %3885 = vmatprep.subr.mxu1 %v4573_v1 }
0x1284   : > { %v4207_v63 = vpop.eup %4206 }
0x1285   : > { %v2736_v32 = vmul.f32 %v4207_v63, %v4203_v20  ;;  %v4175_v37 = vpop.permute.xlu1 %4174  ;;  %v3261_v20 = vld [vmem:[%s5503_s7] sm:$0xff] }
0x1286   : > { %v4177_v38 = vunpack.i.h.bf16 %v4175_v37  ;;  %v4176_v39 = vunpack.i.l.bf16 %v4175_v37  ;;  %v3994_v23 = vpack.c.bf16 %v3262_v21, %v3261_v20  ;;  %v3641_v63 = vld [vmem:[%s5504_s22] ss:$0 sm:$0xff]  ;;  %s4472_s22 = scalar_lea.vmem %s5365_s13, 128 }
0x1287   : > { %3883 = vmatmul.mubr.msk.f32.vlgmr.msra.gmra.mrb[20].mxu1 %vm2231_vm4, %v2736_v32  ;;  %p4473_p10 = scmp.ne.s32.totalorder %s5365_s13, %s4472_s22  ;;  %p4480_p11 = scmp.lt.s32.totalorder %s4478_s17, %s4472_s22 }
0x1288   : > { %3887 = vmatprep.mubr.msk.f32.mxu1 %vm4572_vm0, %v4573_v1  ;;  %3886 = vmatpush3.msra.mxu1 %v2816_v35  ;;  %v3985_v41 = vpack.c.bf16 %v4177_v38, %v4176_v39  ;;  %v3643_v35 = vld [vmem:[%s5506_s16] ss:$0 sm:$0xff] }
0x1289   : > { %3984 = vmatprep.subr.bf16.mxu1 %v4571_v0  ;;  %p4474_p9 = pnand %p4473_p10, %p5511_p5  ;;  %p4481_p3 = por %p4480_p11, %p4479_p8 }
0x128b   : > { %p4475_p4 = pneg %p4474_p9 }
0x128c   : > { %v4209_v40 = vpop.eup %4208 }
0x128d   : > { %v2984_v44 = vmul.f32 %v4209_v40, %v4205_v22  ;;  %v3263_v22 = vld [vmem:[%s5503_s7 + $0x10] sm:$0xff]  ;;  %p4482_p12 = pnand %p4481_p3, %p4475_p4 }
0x128e   : > { %v3997_v25 = vpack.c.bf16 %v3264_v24, %v3263_v22 }
0x12ae   : > { %v1951_v8 = vpop.xlane.xlu0 %1950 }
0x12af   : > { %v1953_v54 = vmul.f32 0.03125, %v1951_v8  ;;  %v3642_v8 = vld [vmem:[%s5505_s23] ss:$0 sm:$0xff] }
0x12b1   : > { %v1954_v33 = vsub.f32 %v1946_v26, %v1953_v54  ;;  %v3265_v26 = vld [vmem:[%s5503_s7 + $0x20] sm:$0xff] }
0x12b2   : > { %v4000_v28 = vpack.c.bf16 %v3266_v27, %v3265_v26 }
0x12b3   : > { %v1955_v11 = vmul.f32 %v1954_v33, %v1954_v33 }
0x12b5   : > { %v1956_v34 = vsel %vm897_vm1, %v1955_v11, 0.0  ;;  %v3268_v11 = vld [vmem:[%s5503_s7 + $0x38] sm:$0xff] }
0x12b6   : > { %1957 = vadd.xlane.f32.xlu1 %v1956_v34 }
0x1343   : > { %v1958_v51 = vpop.xlane.xlu1 %1957 }
0x1344   : > { %v1959_v52 = vmul.f32 0.03125, %v1958_v51 }
0x1346   : > { %v1960_v53 = vadd.f32 1e-05, %v1959_v52 }
0x1348   : > { %4210 = vrsqrt.f32 %v1960_v53 }
0x1352   : > { %v4211_v55 = vpop.eup %4210 }
0x1353   : > { %v1962_v56 = vmul.f32 %v4211_v55, %v1954_v33 }
0x1355   : > { %v1969_v58 = vmul.f32 %v3613_v57, %v1962_v56  ;;  %v3647_v57 = vld [vmem:[%s5508_s19] ss:$0 sm:$0xff] }
0x135a   : > { %v2812_v42 = vpop.f32.mrb[20].mxu1 }
0x135b   : > { %v3884_v43 = vpop.f32.mrb[21].mxu1  ;;  %3888 = vmatmul.mubr.msk.f32.vlgmr.msra.gmra.mrb[22].mxu1 %vm975_vm2, %v2812_v42 }
0x135c   : > { %3986 = vmatpush3.bf16.msra.mxu1 %v3985_v41  ;;  %3901 = vmatprep.mubr.msk.f32.mxu1 %vm4572_vm0, %v4573_v1 }
0x135d   : > { %3904 = vmatprep.subr.mxu1 %v4573_v1 }
0x135f   : > { %3902 = vmatmul.mubr.msk.f32.vlgmr.msra.gmra.mrb[24].mxu1 %vm2231_vm4, %v2984_v44 }
0x1360   : > { %3906 = vmatprep.mubr.msk.f32.mxu1 %vm4572_vm0, %v4573_v1  ;;  %3905 = vmatpush3.msra.mxu1 %v3064_v45 }
0x1361   : > { %3993 = vmatprep.subr.bf16.mxu1 %v4571_v0 }
0x142e   : > { %v2886_v46 = vpop.f32.mrb[22].mxu1 }
0x142f   : > { %v2890_v47 = vadd.f32 %v2886_v46, %v5263_v2  ;;  %v3889_v48 = vpop.f32.mrb[23].mxu1 }
0x1432   : > { %v3060_v49 = vpop.f32.mrb[24].mxu1 }
0x1433   : > { %v3903_v50 = vpop.f32.mrb[25].mxu1  ;;  %3907 = vmatmul.mubr.msk.f32.vlgmr.msra.gmra.mrb[26].mxu1 %vm975_vm2, %v3060_v49 }
0x1434   : > { %3936 = vmatprep.mubr.msk.f32.mxu1 %vm4572_vm0, %v4573_v1  ;;  %v3614_v1 = vld [vmem:[%s5502_s15] ss:$0 sm:$0xff]  ;;  %3995 = vmatpush3.bf16.msra.mxu1 %v3994_v23  ;;  %s5507_s15 = sld [smem:[#allocation42_spill]] }
0x1435   : > { %v1976_v4 = vadd.f32 %v3614_v1, %v1969_v58  ;;  %3996 = vmatprep.subr.bf16.mxu1 %v4571_v0 }
0x1438   : > { %3998 = vmatpush3.bf16.msra.mxu1 %v3997_v25 }
0x1439   : > { %3999 = vmatprep.subr.bf16.mxu1 %v4571_v0 }
0x143a   : > { %v3645_v40 = vld [vmem:[%s5507_s15] ss:$0 sm:$0xff]  ;;  %s3383_s15 = scalar_lea.sflag [#allocation4], %s5034_s20 }
0x143c   : > { %4001 = vmatpush3.bf16.msra.mxu1 %v4000_v28 }
0x143d   : > { %4002 = vmatprep.subr.bf16.mxu1 %v4571_v0  ;;  %v3267_v0 = vld [vmem:[%s5503_s7 + $0x30] sm:$0xff] }
0x143e   : > { %v4003_v34 = vpack.c.bf16 %v3268_v11, %v3267_v0 }
0x1440   : > { %4004 = vmatpush3.bf16.msra.mxu1 %v4003_v34 }
0x1506   : > { %v3134_v60 = vpop.f32.mrb[26].mxu1 }
0x1507   : > { %v3138_v62 = vadd.f32 %v3134_v60, %v2890_v47  ;;  %v3908_v2 = vpop.f32.mrb[27].mxu1 }
0x1509   : > { %v3145_v3 = vadd.f32 %v3640_v59, %v3138_v62  ;;  %v3648_v59 = vld [vmem:[%s5509_s0] ss:$0 sm:$0xff] }
0x150b   : > { %v3146_v5 = vadd.f32 %v3145_v3, %v1976_v4 }
0x150d   : > { %v3149_v6 = vsel %vm897_vm1, %v3146_v5, 0.0 }
0x150e   : > { %3150 = vadd.xlane.f32.xlu0 %v3149_v6 }
0x159b   : > { %v3151_v61 = vpop.xlane.xlu0 %3150 }
0x159c   : > { %v3152_v7 = vmul.f32 0.03125, %v3151_v61 }
0x159e   : > { %v3153_v9 = vsub.f32 %v3146_v5, %v3152_v7 }
0x15a0   : > { %v3154_v10 = vmul.f32 %v3153_v9, %v3153_v9 }
0x15a2   : > { %v3155_v12 = vsel %vm897_vm1, %v3154_v10, 0.0 }
0x15a3   : > { %3156 = vadd.xlane.f32.xlu0 %v3155_v12 }
0x1630   : > { %v3157_v29 = vpop.xlane.xlu0 %3156 }
0x1631   : > { %v3158_v30 = vmul.f32 0.03125, %v3157_v29 }
0x1633   : > { %v3159_v17 = vadd.f32 1e-05, %v3158_v30 }
0x1635   : > { %4212 = vrsqrt.f32 %v3159_v17 }
0x163f   : > { %v4213_v31 = vpop.eup %4212 }
0x1640   : > { %v3161_v32 = vmul.f32 %v4213_v31, %v3153_v9 }
0x1642   : > { %v3168_v54 = vmul.f32 %v3641_v63, %v3161_v32 }
0x1644   : > { %v3175_v33 = vadd.f32 %v3642_v8, %v3168_v54 }
0x1646   : > { %3918 = vmatmul.mubr.msk.f32.vlgmr.msra.gmra.mrb[26].mxu0 %vm897_vm1, %v3175_v33 }
0x1719   : > { %v3256_v36 = vpop.f32.mrb[26].mxu0 }
0x171a   : > { %v3257_v37 = vadd.f32 %v3643_v35, %v3256_v36  ;;  %v3919_v38 = vpop.f32.mrb[27].mxu0 }
0x171c   : > { %v3260_v39 = vmax.f32 %v3257_v37, 0.0 }
0x171e   : > { %3937 = vmatmul.mubr.msk.f32.vlgmr.msra.gmra.mrb[28].mxu1 %vm3276_vm5, %v3260_v39 }
0x17f1   : > { %v3346_v41 = vpop.f32.mrb[28].mxu1 }
0x17f2   : > { %v3347_v42 = vadd.f32 %v3645_v40, %v3346_v41  ;;  %v3938_v43 = vpop.f32.mrb[29].mxu1 }
0x17f4   : > { %v3350_v44 = vmax.f32 %v3347_v42, 0.0 }
0x17f6   : > { %v3351_v45 = vadd.f32 %v3350_v44, %v3175_v33 }
0x17f8   : > { %v3354_v46 = vsel %vm897_vm1, %v3351_v45, 0.0 }
0x17f9   : > { %3355 = vadd.xlane.f32.xlu0 %v3354_v46 }
0x1886   : > { %v3356_v47 = vpop.xlane.xlu0 %3355 }
0x1887   : > { %v3357_v48 = vmul.f32 0.03125, %v3356_v47 }
0x1889   : > { %v3358_v49 = vsub.f32 %v3351_v45, %v3357_v48 }
0x188b   : > { %v3359_v50 = vmul.f32 %v3358_v49, %v3358_v49 }
0x188d   : > { %v3360_v51 = vsel %vm897_vm1, %v3359_v50, 0.0 }
0x188e   : > { %3361 = vadd.xlane.f32.xlu1 %v3360_v51 }
0x191b   : > { %v3362_v52 = vpop.xlane.xlu1 %3361 }
0x191c   : > { %v3363_v53 = vmul.f32 0.03125, %v3362_v52 }
0x191e   : > { %v3364_v55 = vadd.f32 1e-05, %v3363_v53 }
0x1920   : > { %4214 = vrsqrt.f32 %v3364_v55 }
0x192a   : > { %v4215_v56 = vpop.eup %4214 }
0x192b   : > { %v3366_v58 = vmul.f32 %v4215_v56, %v3358_v49 }
0x192d   : > { %v3373_v60 = vmul.f32 %v3647_v57, %v3366_v58 }
0x192f   : > { %v3380_v1 = vadd.f32 %v3648_v59, %v3373_v60 }
0x1931   : > { %3381 = vst.msk [vmem:[%s877_s5] sm:$0xff] %vm897_vm1, %v3380_v1 }
0x1932   : > { %4485 = shalt.err (!%p4482_p12)
}
0x1933   : > { %s4486_s20 = scalar_lea.hbm %s5363_s27, 128  ;;  %s4490_s9 = scalar_lea.hbm %s5510_s29, 256 }
0x1934   : > { %p4487_p1 = scmp.ne.s32.totalorder %s5363_s27, %s4486_s20  ;;  %p4491_p7 = scmp.lt.u32.totalorder %s5363_s27, %s5510_s29 }
0x1935   : > { %p4492_p2 = scmp.lt.u32.totalorder %s4490_s9, %s4486_s20  ;;  %p4494_p10 = scmp.lt.u32.totalorder %s4486_s20, %s5363_s27 }
0x1936   : > { %p4488_p13 = pnand %p4487_p1, %p5511_p5 }
0x1937   : > { %p4493_p6 = por %p4492_p2, %p4491_p7 }
0x1938   : > { %p4489_p0 = pneg %p4488_p13 }
0x1939   : > { %p4495_p9 = por %p4494_p10, %p4493_p6 }
0x193b   : > { %p4496_p4 = pnand %p4495_p9, %p4489_p0 }
0x193d   : > { %4499 = shalt.err (!%p4496_p4)
}
0x193e   : > { %4037 = dma.vmem_to_hbm [thread:$0]  (%p5511_p5), %s5365_s13, 128, %s5363_s27, %s3383_s15  }
0x193f PF: > { %s3408_s5 = sand.u32 1, %s4546_s4   ;;  %p5512_p8 = scmp.ne.s32.totalorder %s5481_s1, 0 }
0x1940   : > { %p5513_p11 = scmp.ge.s32.totalorder %s4558_s25, 2  ;;  %s3409_s2 = scalar_lea.sflag [#allocation4], %s3408_s5 }
0x1942   : > { %p4069_p3 = pnand %p5513_p11, %p5512_p8 }
0x1944   : > { %4541 = dma.done.wait (!%p4069_p3), %s3409_s2, 128  }
0x1945   : > { %4543 = vsyncadd (!%p4069_p3), %s3409_s2, 4294967168  ;;  %p42_p12 = scmp.ge.s32.totalorder %s4919_s6, 4   ;;  %s5514_s4 = smov %s4550_s30 }
0x1946   : > { %s5515_s30 = smov %s4554_s24  ;;  %s5516_s24 = smov %s4931_s8 }
0x1947   : > { %s5517_s25 = smov %s4919_s6  ;;  %44 = sbr.rel (!%p42_p12) target bundleno = 32 (0x20), region = 201 }
0x194e   :  { %3414 = vsyncpa [#allocation3], 1 }
0x194f   :  { %3416 = vsyncpa [#allocation3 + $0x1], 1 }
0x1950   :  { %3417 = vsyncpa [#allocation6], 1 }
0x1951   :  { %3419 = vsyncpa [#allocation6 + $0x1], 1 }
0x1952   :  { %3420 = vsyncpa [#allocation9], 1 }
0x1953   :  { %3421 = vsyncpa [#allocation12], 1 }
0x1954   :  { %3422 = vsyncpa [#allocation15], 1 }
0x1955   :  { %3423 = vsyncpa [#allocation4], 1 }
0x1956   :  { %3425 = vsyncpa [#allocation4 + $0x1], 1 }

</bundles_post_ra>
